<compile_context>
chip_gen: v5e
topology: v5e:2x2
jax: 0.10.0
libtpu: 0.0.40
codegen_flags: <defaults>
</compile_context>

<pallas_src>
import jax
import jax.numpy as jnp
from jax.experimental import pallas as pl
from jax.experimental.pallas import tpu as pltpu

NEG = -1e30


def _round_up(x, m):
    return (x + m - 1) // m * m


def _physical_vmem_bytes():
    try:
        return int(pltpu.get_tpu_info().vmem_capacity_bytes)
    except Exception:
        return 64 << 20          # conservative default (v7x per-TensorCore VMEM)


def _vmem_per_example_bytes(L1p, L2p, Hp, Ep):
    # ~6 live f32 [Lp,Hp] intermediates + ~4 bf16 copies, score/prob matrices,
    # plus double-buffered bf16 embedding blocks.
    act = (L1p + L2p) * Hp * (6 * 4 + 4 * 2)
    score = L1p * L2p * (3 * 4 + 2)
    inputs = 2 * (L1p + L2p) * Ep * 2
    return act + score + inputs


def _weights_vmem_bytes(Ep, Hp, Cp):
    w = Ep * Hp + 8 * Hp * Hp + Hp * Cp      # bf16 matrices
    b = 7 * Hp + Cp                          # f32 biases
    return 2 * (2 * w + 4 * b)               # x2: default double-buffering


def _choose_batch_block(B, per_ex, w_bytes, block_b, vmem_budget):
    """Pick the batch block from the VMEM-liveness estimate (re-derived per chip)."""
    usable = max(vmem_budget - w_bytes - (4 << 20), 8 * per_ex)
    cap = max(8, int(usable // per_ex) // 8 * 8)
    Bblk = int(min(block_b, cap))
    Bblk = max(8, Bblk // 8 * 8)
    if B <= Bblk:
        if B >= 16:
            # Guarantee >=2 grid steps so dimension_semantics=("parallel",) can
            # shard across both v7x TensorCores (neutral on v5e/v6e).
            Bblk = _round_up((B + 1) // 2, 8)
            B_pad = 2 * Bblk
        else:
            Bblk, B_pad = B, B
    else:
        B_pad = _round_up(B, Bblk)
    return Bblk, B_pad


# ---------------------------------------------------------------------------
# Pallas kernel: decomposable-attention forward for a block of Bblk examples
# ---------------------------------------------------------------------------
def _make_kernel(Bblk, L1, L2, L1p, L2p, Hp):

    def kernel(e1_ref, e2_ref,                       # [Bblk*L1p, Ep], [Bblk*L2p, Ep] bf16
               w_in_ref,                             # [Ep, Hp] bf16
               wf1_ref, bf1_ref, wf2_ref, bf2_ref,   # mlp_f
               wg1a_ref, wg1b_ref, bg1_ref, wg2_ref, bg2_ref,   # mlp_g (split layer 1)
               wh1a_ref, wh1b_ref, bh1_ref, wh2_ref, bh2_ref,   # mlp_h (split layer 1)
               wfin_ref, bfin_ref,                   # final linear
               out_ref):                             # [Bblk, Cp] f32
        f32 = jnp.float32
        bf16 = jnp.bfloat16

        def dot32(a, b):
            return jnp.dot(a, b, preferred_element_type=f32)

        def relu(x):
            return jnp.maximum(x, 0.0)

        # ---- encoder: Linear(E -> H, bias=False); batch*length folded into M ----
        # Cast the encoder outputs to bf16 ONCE and reuse (mlp_f input, attention
        # values, mlp_g input) — no duplicate f32/bf16 copies kept live.
        s1_bf = dot32(e1_ref[...], w_in_ref[...]).astype(bf16)   # [Bblk*L1p, Hp]
        s2_bf = dot32(e2_ref[...], w_in_ref[...]).astype(bf16)   # [Bblk*L2p, Hp]

        # ---- attend: mlp_f (dropout = identity) ----
        def mlp_f(x_bf):
            h = relu(dot32(x_bf, wf1_ref[...]) + bf1_ref[...])
            return relu(dot32(h.astype(bf16), wf2_ref[...]) + bf2_ref[...])

        f1_bf = mlp_f(s1_bf).astype(bf16).reshape(Bblk, L1p, Hp)
        f2_bf = mlp_f(s2_bf).astype(bf16).reshape(Bblk, L2p, Hp)

        # ---- single score matmul; both softmax directions derived from it ----
        score1 = jnp.einsum('bld,bmd->blm', f1_bf, f2_bf,
                            preferred_element_type=f32)          # [Bblk, L1p, L2p]

        key2_valid = jax.lax.broadcasted_iota(jnp.int32, (1, 1, L2p), 2) < L2
        row1_valid = jax.lax.broadcasted_iota(jnp.int32, (1, L1p, 1), 1) < L1
        row2_valid = jax.lax.broadcasted_iota(jnp.int32, (1, L2p, 1), 1) < L2

        # softmax over L2 (minor axis), padded key columns masked
        sc1 = jnp.where(key2_valid, score1, NEG)
        m1 = jnp.max(sc1, axis=-1, keepdims=True)
        p1 = jnp.exp(sc1 - m1)
        prob1 = p1 * pl.reciprocal(jnp.sum(p1, axis=-1, keepdims=True), approx=True)

        # softmax over L1 (sublane axis), padded query rows masked — this IS prob2,
        # just stored in the [b, l, m] orientation.
        sc2 = jnp.where(row1_valid, score1, NEG)
        m2 = jnp.max(sc2, axis=1, keepdims=True)
        p2 = jnp.exp(sc2 - m2)
        probT = p2 * pl.reciprocal(jnp.sum(p2, axis=1, keepdims=True), approx=True)
        # One cheap f32 XLU transpose (idle slot) replaces the old second MXU einsum
        # and its f32 [Bblk, L2p, L1p] score buffer.
        prob2 = jnp.swapaxes(probT, 1, 2)                        # [Bblk, L2p, L1p]

        s1_3 = s1_bf.reshape(Bblk, L1p, Hp)
        s2_3 = s2_bf.reshape(Bblk, L2p, Hp)
        attended1 = jnp.einsum('blm,bmd->bld', prob1.astype(bf16), s2_3,
                               preferred_element_type=f32)       # [Bblk, L1p, Hp]
        attended2 = jnp.einsum('bml,bld->bmd', prob2.astype(bf16), s1_3,
                               preferred_element_type=f32)       # [Bblk, L2p, Hp]

        a1_bf = attended1.reshape(Bblk * L1p, Hp).astype(bf16)
        a2_bf = attended2.reshape(Bblk * L2p, Hp).astype(bf16)

        # ---- compare: mlp_g on [x, attended] via split weights (no lane concat) ----
        def mlp_g(x_bf, a_bf):
            h = relu(dot32(x_bf, wg1a_ref[...]) + dot32(a_bf, wg1b_ref[...])
                     + bg1_ref[...])
            return relu(dot32(h.astype(bf16), wg2_ref[...]) + bg2_ref[...])

        g1 = mlp_g(s1_bf, a1_bf)                                 # [Bblk*L1p, Hp] f32
        g2 = mlp_g(s2_bf, a2_bf)                                 # [Bblk*L2p, Hp] f32

        # ---- aggregate: masked sum over length (padded rows carry bias garbage) ----
        sent1 = jnp.sum(jnp.where(row1_valid, g1.reshape(Bblk, L1p, Hp), 0.0), axis=1)
        sent2 = jnp.sum(jnp.where(row2_valid, g2.reshape(Bblk, L2p, Hp), 0.0), axis=1)

        # ---- mlp_h on [sent1, sent2] via split weights, then final linear ----
        h = relu(dot32(sent1.astype(bf16), wh1a_ref[...])
                 + dot32(sent2.astype(bf16), wh1b_ref[...]) + bh1_ref[...])
        h = relu(dot32(h.astype(bf16), wh2_ref[...]) + bh2_ref[...])

        # Padded class columns have zero weights and a -1e30 bias -> exp() == 0 below.
        logits = dot32(h.astype(bf16), wfin_ref[...]) + bfin_ref[...]   # [Bblk, Cp]

        m = jnp.max(logits, axis=-1, keepdims=True)
        lse = jnp.log(jnp.sum(jnp.exp(logits - m), axis=-1, keepdims=True)) + m
        out_ref[...] = logits - lse

    return kernel


# ---------------------------------------------------------------------------
# Wrapper: embedding lookup (glue), padding, weight split/pad, pallas_call
# ---------------------------------------------------------------------------
def decomp_attn_forward(claim, evidence, params, block_b=256, vmem_budget_bytes=None):
    B, L1 = claim.shape
    L2 = evidence.shape[1]
    E = params["embedding"].shape[1]
    H = params["w_in"].shape[1]
    C = params["w_fin"].shape[1]

    bf16 = jnp.bfloat16
    f32 = jnp.float32

    # Lengths -> multiples of 16 (bf16 sublane pairs); feature dims -> 128-lane multiples.
    L1p = _round_up(L1, 16)
    L2p = _round_up(L2, 16)
    E_pad = _round_up(E, 128)
    H_pad = _round_up(H, 128)
    C_pad = _round_up(C, 128)

    vmem_budget = vmem_budget_bytes or _physical_vmem_bytes()
    per_ex = _vmem_per_example_bytes(L1p, L2p, H_pad, E_pad)
    w_bytes = _weights_vmem_bytes(E_pad, H_pad, C_pad)
    Bblk, B_pad = _choose_batch_block(B, per_ex, w_bytes, block_b, vmem_budget)
    num_steps = B_pad // Bblk

    # Embedding gather directly in bf16, single pad+reshape pass.
    # TODO(synk): replace with an in-kernel DMA gather (scalar-prefetched token ids).
    emb_bf = params["embedding"].astype(bf16)
    e1f = jnp.pad(emb_bf[claim],
                  ((0, B_pad - B), (0, L1p - L1), (0, E_pad - E))
                  ).reshape(B_pad * L1p, E_pad)
    e2f = jnp.pad(emb_bf[evidence],
                  ((0, B_pad - B), (0, L2p - L2), (0, E_pad - E))
                  ).reshape(B_pad * L2p, E_pad)

    def pw(w, rows, cols):        # zero-pad weight matrix, cast bf16 (padding is inert)
        return jnp.pad(w, ((0, rows - w.shape[0]), (0, cols - w.shape[1]))).astype(bf16)

    def pb(b):                    # zero-pad bias row (stays f32)
        return jnp.pad(b, ((0, 0), (0, H_pad - b.shape[1])))

    weights = [
        pw(params["w_in"], E_pad, H_pad),
        pw(params["w_f1"], H_pad, H_pad), pb(params["b_f1"]),
        pw(params["w_f2"], H_pad, H_pad), pb(params["b_f2"]),
        pw(params["w_g1"][:H], H_pad, H_pad), pw(params["w_g1"][H:], H_pad, H_pad),
        pb(params["b_g1"]),
        pw(params["w_g2"], H_pad, H_pad), pb(params["b_g2"]),
        pw(params["w_h1"][:H], H_pad, H_pad), pw(params["w_h1"][H:], H_pad, H_pad),
        pb(params["b_h1"]),
        pw(params["w_h2"], H_pad, H_pad), pb(params["b_h2"]),
        pw(params["w_fin"], H_pad, C_pad),
        # padded class columns: -1e30 bias so they vanish in the log-softmax
        jnp.pad(params["b_fin"], ((0, 0), (0, C_pad - C)), constant_values=NEG),
    ]

    in_specs = [
        pl.BlockSpec((Bblk * L1p, E_pad), lambda i: (i, 0)),
        pl.BlockSpec((Bblk * L2p, E_pad), lambda i: (i, 0)),
    ] + [
        # Grid-invariant weight tiles (still double-buffered by default; for very
        # large E consider pipeline_mode=pl.Buffered(1) to recover one copy of VMEM).
        pl.BlockSpec(w.shape, lambda i, _nd=w.ndim: (0,) * _nd) for w in weights
    ]

    flops = B_pad * (
        2 * (L1p + L2p) * (E_pad * H_pad + 5 * H_pad * H_pad)
        + 6 * L1p * L2p * H_pad
        + 2 * (3 * H_pad * H_pad + H_pad * C_pad))
    transcendentals = B_pad * (2 * L1p * L2p + C_pad)
    bytes_accessed = (
        B_pad * (L1p + L2p) * E_pad * 2
        + num_steps * sum(int(w.size) * w.dtype.itemsize for w in weights)
        + B_pad * C_pad * 4)

    vmem_limit = int(min(vmem_budget - (2 << 20),
                         max(32 << 20, w_bytes + per_ex * Bblk + (8 << 20))))

    kernel = _make_kernel(Bblk, L1, L2, L1p, L2p, H_pad)

    out = pl.pallas_call(
        kernel,
        grid=(num_steps,),
        in_specs=in_specs,
        out_specs=pl.BlockSpec((Bblk, C_pad), lambda i: (i, 0)),
        out_shape=jax.ShapeDtypeStruct((B_pad, C_pad), f32),
        compiler_params=pltpu.CompilerParams(
            dimension_semantics=("parallel",),    # batch blocks independent
            vmem_limit_bytes=vmem_limit,
        ),
        cost_estimate=pl.CostEstimate(
            flops=int(flops),
            transcendentals=int(transcendentals),
            bytes_accessed=int(bytes_accessed)),
    )(e1f, e2f, *weights)
    return out[:B, :C]


# ---------------------------------------------------------------------------
# Pure-JAX f32 reference (same math) for a correctness check
# ---------------------------------------------------------------------------
def decomp_attn_reference(claim, evidence, p):
    emb = p["embedding"]
    e1 = emb[claim].astype(jnp.float32)
    e2 = emb[evidence].astype(jnp.float32)
    s1 = e1 @ p["w_in"]
    s2 = e2 @ p["w_in"]

    def mlp(x, w1, b1, w2, b2):
        h = jax.nn.relu(x @ w1 + b1)
        return jax.nn.relu(h @ w2 + b2)

    f1 = mlp(s1, p["w_f1"], p["b_f1"], p["w_f2"], p["b_f2"])
    f2 = mlp(s2, p["w_f1"], p["b_f1"], p["w_f2"], p["b_f2"])
    score1 = jnp.einsum("bld,bmd->blm", f1, f2)
    prob1 = jax.nn.softmax(score1, axis=-1)
    prob2 = jax.nn.softmax(jnp.swapaxes(score1, 1, 2), axis=-1)
    c1 = jnp.concatenate([s1, jnp.einsum("blm,bmd->bld", prob1, s2)], axis=2)
    c2 = jnp.concatenate([s2, jnp.einsum("bml,bld->bmd", prob2, s1)], axis=2)
    g1 = mlp(c1, p["w_g1"], p["b_g1"], p["w_g2"], p["b_g2"])
    g2 = mlp(c2, p["w_g1"], p["b_g1"], p["w_g2"], p["b_g2"])
    comb = jnp.concatenate([g1.sum(axis=1), g2.sum(axis=1)], axis=1)
    h = mlp(comb, p["w_h1"], p["b_h1"], p["w_h2"], p["b_h2"])
    logits = h @ p["w_fin"] + p["b_fin"]
    return jax.nn.log_softmax(logits, axis=-1)


# ---------------------------------------------------------------------------
# Deterministic parameter init + driver
# ---------------------------------------------------------------------------
def init_params(key, vocab, E, H, C, para_init=0.01):
    ks = jax.random.split(key, 16)
    n = lambda k, shp, std: std * jax.random.normal(k, shp, jnp.float32)
    return {
        # pretrained word embedding (word_vocab_embed equivalent)
        "embedding": jax.random.normal(ks[0], (vocab, E), jnp.float32),
        # encoder: Linear(E, H, bias=False)  (stored as [in, out])
        "w_in": n(ks[1], (E, H), para_init),
        # mlp_f: Linear(H,H), Linear(H,H)
        "w_f1": n(ks[2], (H, H), para_init), "b_f1": n(ks[3], (1, H), para_init),
        "w_f2": n(ks[4], (H, H), para_init), "b_f2": n(ks[5], (1, H), para_init),
        # mlp_g: Linear(2H,H), Linear(H,H)
        "w_g1": n(ks[6], (2 * H, H), para_init), "b_g1": n(ks[7], (1, H), para_init),
        "w_g2": n(ks[8], (H, H), para_init), "b_g2": n(ks[9], (1, H), para_init),
        # mlp_h: Linear(2H,H), Linear(H,H)
        "w_h1": n(ks[10], (2 * H, H), para_init), "b_h1": n(ks[11], (1, H), para_init),
        "w_h2": n(ks[12], (H, H), para_init), "b_h2": n(ks[13], (1, H), para_init),
        # final: Linear(H, C)
        "w_fin": n(ks[14], (H, C), para_init), "b_fin": n(ks[15], (1, C), para_init),
    }


if __name__ == "__main__":
    B, L1, L2 = 4, 8, 12          # L2 not a multiple of 16 -> exercises the masking path
    VOCAB, E, H, C = 50, 16, 32, 4

    key = jax.random.PRNGKey(0)
    k_par, k_c, k_e = jax.random.split(key, 3)
    params = init_params(k_par, VOCAB, E, H, C, para_init=0.01)

    claim = jax.random.randint(k_c, (B, L1), 0, VOCAB, dtype=jnp.int32)
    evidence = jax.random.randint(k_e, (B, L2), 0, VOCAB, dtype=jnp.int32)

    log_prob = decomp_attn_forward(claim, evidence, params)
    log_prob = jax.block_until_ready(log_prob)

    ref = decomp_attn_reference(claim, evidence, params)
    assert log_prob.shape == (B, C)
    # Kernel uses bf16 operands + approx EUP reciprocal -> tolerance looser than 1e-5.
    assert jnp.allclose(log_prob, ref, atol=5e-3, rtol=5e-3), (
        log_prob, ref, jnp.max(jnp.abs(log_prob - ref)))

    print("KERNEL_OK")
</pallas_src>

<mosaic_0001>
module attributes {stable_mosaic.version = 11 : i64} {
  func.func @kernel(%arg0: i32, %arg1: memref<64x128xbf16, #tpu.memory_space<vmem>>, %arg2: memref<64x128xbf16, #tpu.memory_space<vmem>>, %arg3: memref<128x128xbf16, #tpu.memory_space<vmem>>, %arg4: memref<128x128xbf16, #tpu.memory_space<vmem>>, %arg5: memref<1x128xf32, #tpu.memory_space<vmem>>, %arg6: memref<128x128xbf16, #tpu.memory_space<vmem>>, %arg7: memref<1x128xf32, #tpu.memory_space<vmem>>, %arg8: memref<128x128xbf16, #tpu.memory_space<vmem>>, %arg9: memref<128x128xbf16, #tpu.memory_space<vmem>>, %arg10: memref<1x128xf32, #tpu.memory_space<vmem>>, %arg11: memref<128x128xbf16, #tpu.memory_space<vmem>>, %arg12: memref<1x128xf32, #tpu.memory_space<vmem>>, %arg13: memref<128x128xbf16, #tpu.memory_space<vmem>>, %arg14: memref<128x128xbf16, #tpu.memory_space<vmem>>, %arg15: memref<1x128xf32, #tpu.memory_space<vmem>>, %arg16: memref<128x128xbf16, #tpu.memory_space<vmem>>, %arg17: memref<1x128xf32, #tpu.memory_space<vmem>>, %arg18: memref<128x128xbf16, #tpu.memory_space<vmem>>, %arg19: memref<1x128xf32, #tpu.memory_space<vmem>>, %arg20: memref<4x128xf32, #tpu.memory_space<vmem>>) attributes {dimension_semantics = [#tpu.dimension_semantics<parallel>], iteration_bounds = array<i64: 1>, scalar_prefetch = 0 : i64, scratch_operands = 0 : i64, tpu.core_type = #tpu.core_type<tc>, window_params = [{transform_indices = @transform_0, window_bounds = array<i64: 64, 128>}, {transform_indices = @transform_1, window_bounds = array<i64: 64, 128>}, {pipeline_mode = #tpu.pipeline_mode<synchronous>, transform_indices = @transform_2, window_bounds = array<i64: 128, 128>}, {pipeline_mode = #tpu.pipeline_mode<synchronous>, transform_indices = @transform_3, window_bounds = array<i64: 128, 128>}, {pipeline_mode = #tpu.pipeline_mode<synchronous>, transform_indices = @transform_4, window_bounds = array<i64: 1, 128>}, {pipeline_mode = #tpu.pipeline_mode<synchronous>, transform_indices = @transform_5, window_bounds = array<i64: 128, 128>}, {pipeline_mode = #tpu.pipeline_mode<synchronous>, transform_indices = @transform_6, window_bounds = array<i64: 1, 128>}, {pipeline_mode = #tpu.pipeline_mode<synchronous>, transform_indices = @transform_7, window_bounds = array<i64: 128, 128>}, {pipeline_mode = #tpu.pipeline_mode<synchronous>, transform_indices = @transform_8, window_bounds = array<i64: 128, 128>}, {pipeline_mode = #tpu.pipeline_mode<synchronous>, transform_indices = @transform_9, window_bounds = array<i64: 1, 128>}, {pipeline_mode = #tpu.pipeline_mode<synchronous>, transform_indices = @transform_10, window_bounds = array<i64: 128, 128>}, {pipeline_mode = #tpu.pipeline_mode<synchronous>, transform_indices = @transform_11, window_bounds = array<i64: 1, 128>}, {pipeline_mode = #tpu.pipeline_mode<synchronous>, transform_indices = @transform_12, window_bounds = array<i64: 128, 128>}, {pipeline_mode = #tpu.pipeline_mode<synchronous>, transform_indices = @transform_13, window_bounds = array<i64: 128, 128>}, {pipeline_mode = #tpu.pipeline_mode<synchronous>, transform_indices = @transform_14, window_bounds = array<i64: 1, 128>}, {pipeline_mode = #tpu.pipeline_mode<synchronous>, transform_indices = @transform_15, window_bounds = array<i64: 128, 128>}, {pipeline_mode = #tpu.pipeline_mode<synchronous>, transform_indices = @transform_16, window_bounds = array<i64: 1, 128>}, {pipeline_mode = #tpu.pipeline_mode<synchronous>, transform_indices = @transform_17, window_bounds = array<i64: 128, 128>}, {pipeline_mode = #tpu.pipeline_mode<synchronous>, transform_indices = @transform_18, window_bounds = array<i64: 1, 128>}, {transform_indices = @transform_19, window_bounds = array<i64: 4, 128>}]} {
    %c0 = arith.constant 0 : index
    %c0_0 = arith.constant 0 : index
    %0 = vector.load %arg1[%c0, %c0_0] : memref<64x128xbf16, #tpu.memory_space<vmem>>, vector<64x128xbf16>
    %c0_1 = arith.constant 0 : index
    %c0_2 = arith.constant 0 : index
    %1 = vector.load %arg3[%c0_1, %c0_2] : memref<128x128xbf16, #tpu.memory_space<vmem>>, vector<128x128xbf16>
    %cst = arith.constant dense<0.000000e+00> : vector<64x128xf32>
    %2 = tpu.matmul %0, %1, %cst {dimension_numbers = #tpu.dot_dimension_numbers<[1], [0], [0], [1], [0, 0, 1, 1], [], []>} : vector<64x128xbf16>, vector<128x128xbf16>, vector<64x128xf32> -> vector<64x128xf32>
    %3 = arith.truncf %2 : vector<64x128xf32> to vector<64x128xbf16>
    %c0_3 = arith.constant 0 : index
    %c0_4 = arith.constant 0 : index
    %4 = vector.load %arg2[%c0_3, %c0_4] : memref<64x128xbf16, #tpu.memory_space<vmem>>, vector<64x128xbf16>
    %c0_5 = arith.constant 0 : index
    %c0_6 = arith.constant 0 : index
    %5 = vector.load %arg3[%c0_5, %c0_6] : memref<128x128xbf16, #tpu.memory_space<vmem>>, vector<128x128xbf16>
    %cst_7 = arith.constant dense<0.000000e+00> : vector<64x128xf32>
    %6 = tpu.matmul %4, %5, %cst_7 {dimension_numbers = #tpu.dot_dimension_numbers<[1], [0], [0], [1], [0, 0, 1, 1], [], []>} : vector<64x128xbf16>, vector<128x128xbf16>, vector<64x128xf32> -> vector<64x128xf32>
    %7 = arith.truncf %6 : vector<64x128xf32> to vector<64x128xbf16>
    %c0_8 = arith.constant 0 : index
    %c0_9 = arith.constant 0 : index
    %8 = vector.load %arg4[%c0_8, %c0_9] : memref<128x128xbf16, #tpu.memory_space<vmem>>, vector<128x128xbf16>
    %cst_10 = arith.constant dense<0.000000e+00> : vector<64x128xf32>
    %9 = tpu.matmul %3, %8, %cst_10 {dimension_numbers = #tpu.dot_dimension_numbers<[1], [0], [0], [1], [0, 0, 1, 1], [], []>} : vector<64x128xbf16>, vector<128x128xbf16>, vector<64x128xf32> -> vector<64x128xf32>
    %c0_11 = arith.constant 0 : index
    %c0_12 = arith.constant 0 : index
    %10 = vector.load %arg5[%c0_11, %c0_12] : memref<1x128xf32, #tpu.memory_space<vmem>>, vector<1x128xf32>
    %11 = vector.broadcast %10 : vector<1x128xf32> to vector<64x128xf32>
    %12 = arith.addf %9, %11 : vector<64x128xf32>
    %cst_13 = arith.constant 0.000000e+00 : f32
    %13 = vector.broadcast %cst_13 : f32 to vector<64x128xf32>
    %14 = arith.maximumf %12, %13 : vector<64x128xf32>
    %15 = arith.truncf %14 : vector<64x128xf32> to vector<64x128xbf16>
    %c0_14 = arith.constant 0 : index
    %c0_15 = arith.constant 0 : index
    %16 = vector.load %arg6[%c0_14, %c0_15] : memref<128x128xbf16, #tpu.memory_space<vmem>>, vector<128x128xbf16>
    %cst_16 = arith.constant dense<0.000000e+00> : vector<64x128xf32>
    %17 = tpu.matmul %15, %16, %cst_16 {dimension_numbers = #tpu.dot_dimension_numbers<[1], [0], [0], [1], [0, 0, 1, 1], [], []>} : vector<64x128xbf16>, vector<128x128xbf16>, vector<64x128xf32> -> vector<64x128xf32>
    %c0_17 = arith.constant 0 : index
    %c0_18 = arith.constant 0 : index
    %18 = vector.load %arg7[%c0_17, %c0_18] : memref<1x128xf32, #tpu.memory_space<vmem>>, vector<1x128xf32>
    %19 = vector.broadcast %18 : vector<1x128xf32> to vector<64x128xf32>
    %20 = arith.addf %17, %19 : vector<64x128xf32>
    %cst_19 = arith.constant 0.000000e+00 : f32
    %21 = vector.broadcast %cst_19 : f32 to vector<64x128xf32>
    %22 = arith.maximumf %20, %21 : vector<64x128xf32>
    %23 = arith.truncf %22 : vector<64x128xf32> to vector<64x128xbf16>
    %24 = vector.shape_cast %23 : vector<64x128xbf16> to vector<4x16x128xbf16>
    %c0_20 = arith.constant 0 : index
    %c0_21 = arith.constant 0 : index
    %25 = vector.load %arg4[%c0_20, %c0_21] : memref<128x128xbf16, #tpu.memory_space<vmem>>, vector<128x128xbf16>
    %cst_22 = arith.constant dense<0.000000e+00> : vector<64x128xf32>
    %26 = tpu.matmul %7, %25, %cst_22 {dimension_numbers = #tpu.dot_dimension_numbers<[1], [0], [0], [1], [0, 0, 1, 1], [], []>} : vector<64x128xbf16>, vector<128x128xbf16>, vector<64x128xf32> -> vector<64x128xf32>
    %c0_23 = arith.constant 0 : index
    %c0_24 = arith.constant 0 : index
    %27 = vector.load %arg5[%c0_23, %c0_24] : memref<1x128xf32, #tpu.memory_space<vmem>>, vector<1x128xf32>
    %28 = vector.broadcast %27 : vector<1x128xf32> to vector<64x128xf32>
    %29 = arith.addf %26, %28 : vector<64x128xf32>
    %cst_25 = arith.constant 0.000000e+00 : f32
    %30 = vector.broadcast %cst_25 : f32 to vector<64x128xf32>
    %31 = arith.maximumf %29, %30 : vector<64x128xf32>
    %32 = arith.truncf %31 : vector<64x128xf32> to vector<64x128xbf16>
    %c0_26 = arith.constant 0 : index
    %c0_27 = arith.constant 0 : index
    %33 = vector.load %arg6[%c0_26, %c0_27] : memref<128x128xbf16, #tpu.memory_space<vmem>>, vector<128x128xbf16>
    %cst_28 = arith.constant dense<0.000000e+00> : vector<64x128xf32>
    %34 = tpu.matmul %32, %33, %cst_28 {dimension_numbers = #tpu.dot_dimension_numbers<[1], [0], [0], [1], [0, 0, 1, 1], [], []>} : vector<64x128xbf16>, vector<128x128xbf16>, vector<64x128xf32> -> vector<64x128xf32>
    %c0_29 = arith.constant 0 : index
    %c0_30 = arith.constant 0 : index
    %35 = vector.load %arg7[%c0_29, %c0_30] : memref<1x128xf32, #tpu.memory_space<vmem>>, vector<1x128xf32>
    %36 = vector.broadcast %35 : vector<1x128xf32> to vector<64x128xf32>
    %37 = arith.addf %34, %36 : vector<64x128xf32>
    %cst_31 = arith.constant 0.000000e+00 : f32
    %38 = vector.broadcast %cst_31 : f32 to vector<64x128xf32>
    %39 = arith.maximumf %37, %38 : vector<64x128xf32>
    %40 = arith.truncf %39 : vector<64x128xf32> to vector<64x128xbf16>
    %41 = vector.shape_cast %40 : vector<64x128xbf16> to vector<4x16x128xbf16>
    "tpu.trace_start"() <{level = 10 : i32, message = "bld,bmd->blm"}> : () -> ()
    %cst_32 = arith.constant dense<0.000000e+00> : vector<4x16x16xf32>
    %42 = tpu.matmul %24, %41, %cst_32 {dimension_numbers = #tpu.dot_dimension_numbers<[2], [2], [1], [1], [0, 0, 0, 1, 1, 1], [0], [0]>} : vector<4x16x128xbf16>, vector<4x16x128xbf16>, vector<4x16x16xf32> -> vector<4x16x16xf32>
    "tpu.trace_stop"() : () -> ()
    %43 = tpu.iota {dimensions = array<i32: 2>} : vector<1x1x16xi32>
    %c12_i32 = arith.constant 12 : i32
    %44 = vector.broadcast %c12_i32 : i32 to vector<1x1x16xi32>
    %45 = arith.cmpi slt, %43, %44 : vector<1x1x16xi32>
    %46 = tpu.iota {dimensions = array<i32: 1>} : vector<1x16x1xi32>
    %c8_i32 = arith.constant 8 : i32
    %47 = vector.broadcast %c8_i32 : i32 to vector<1x16x1xi32>
    %48 = arith.cmpi slt, %46, %47 : vector<1x16x1xi32>
    %49 = tpu.iota {dimensions = array<i32: 1>} : vector<1x16x1xi32>
    %c12_i32_33 = arith.constant 12 : i32
    %50 = vector.broadcast %c12_i32_33 : i32 to vector<1x16x1xi32>
    %51 = arith.cmpi slt, %49, %50 : vector<1x16x1xi32>
    %cst_34 = arith.constant -1.000000e+30 : f32
    %52 = vector.shape_cast %45 : vector<1x1x16xi1> to vector<1x1x16xi1>
    %53 = vector.broadcast %52 : vector<1x1x16xi1> to vector<4x16x16xi1>
    %54 = vector.broadcast %cst_34 : f32 to vector<4x16x16xf32>
    %55 = arith.select %53, %42, %54 : vector<4x16x16xi1>, vector<4x16x16xf32>
    %cst_35 = arith.constant dense<0xFF800000> : vector<4x16xf32>
    %56 = vector.multi_reduction <maximumf>, %55, %cst_35 [2] : vector<4x16x16xf32> to vector<4x16xf32>
    %57 = vector.shape_cast %56 : vector<4x16xf32> to vector<4x16x1xf32>
    %58 = vector.broadcast %57 : vector<4x16x1xf32> to vector<4x16x16xf32>
    %59 = arith.subf %55, %58 : vector<4x16x16xf32>
    %60 = math.exp %59 : vector<4x16x16xf32>
    %cst_36 = arith.constant dense<0.000000e+00> : vector<4x16xf32>
    %61 = vector.multi_reduction <add>, %60, %cst_36 [2] : vector<4x16x16xf32> to vector<4x16xf32>
    %62 = vector.shape_cast %61 : vector<4x16xf32> to vector<4x16x1xf32>
    %63 = tpu.reciprocal %62 {approx = true} : vector<4x16x1xf32> -> vector<4x16x1xf32>
    %64 = vector.broadcast %63 : vector<4x16x1xf32> to vector<4x16x16xf32>
    %65 = arith.mulf %60, %64 : vector<4x16x16xf32>
    %cst_37 = arith.constant -1.000000e+30 : f32
    %66 = vector.shape_cast %48 : vector<1x16x1xi1> to vector<1x16x1xi1>
    %67 = vector.broadcast %66 : vector<1x16x1xi1> to vector<4x16x16xi1>
    %68 = vector.broadcast %cst_37 : f32 to vector<4x16x16xf32>
    %69 = arith.select %67, %42, %68 : vector<4x16x16xi1>, vector<4x16x16xf32>
    %cst_38 = arith.constant dense<0xFF800000> : vector<4x16xf32>
    %70 = vector.multi_reduction <maximumf>, %69, %cst_38 [1] : vector<4x16x16xf32> to vector<4x16xf32>
    %71 = vector.shape_cast %70 : vector<4x16xf32> to vector<4x1x16xf32>
    %72 = vector.broadcast %71 : vector<4x1x16xf32> to vector<4x16x16xf32>
    %73 = arith.subf %69, %72 : vector<4x16x16xf32>
    %74 = math.exp %73 : vector<4x16x16xf32>
    %cst_39 = arith.constant dense<0.000000e+00> : vector<4x16xf32>
    %75 = vector.multi_reduction <add>, %74, %cst_39 [1] : vector<4x16x16xf32> to vector<4x16xf32>
    %76 = vector.shape_cast %75 : vector<4x16xf32> to vector<4x1x16xf32>
    %77 = tpu.reciprocal %76 {approx = true} : vector<4x1x16xf32> -> vector<4x1x16xf32>
    %78 = vector.broadcast %77 : vector<4x1x16xf32> to vector<4x16x16xf32>
    %79 = arith.mulf %74, %78 : vector<4x16x16xf32>
    %80 = tpu.transpose %79, [0, 2, 1] : vector<4x16x16xf32> -> vector<4x16x16xf32>
    %81 = vector.shape_cast %3 : vector<64x128xbf16> to vector<4x16x128xbf16>
    %82 = vector.shape_cast %7 : vector<64x128xbf16> to vector<4x16x128xbf16>
    %83 = arith.truncf %65 : vector<4x16x16xf32> to vector<4x16x16xbf16>
    "tpu.trace_start"() <{level = 10 : i32, message = "blm,bmd->bld"}> : () -> ()
    %cst_40 = arith.constant dense<0.000000e+00> : vector<4x16x128xf32>
    %84 = tpu.matmul %83, %82, %cst_40 {dimension_numbers = #tpu.dot_dimension_numbers<[2], [1], [1], [2], [0, 0, 0, 1, 1, 2], [0], [0]>} : vector<4x16x16xbf16>, vector<4x16x128xbf16>, vector<4x16x128xf32> -> vector<4x16x128xf32>
    "tpu.trace_stop"() : () -> ()
    %85 = arith.truncf %80 : vector<4x16x16xf32> to vector<4x16x16xbf16>
    "tpu.trace_start"() <{level = 10 : i32, message = "bml,bld->bmd"}> : () -> ()
    %cst_41 = arith.constant dense<0.000000e+00> : vector<4x16x128xf32>
    %86 = tpu.matmul %85, %81, %cst_41 {dimension_numbers = #tpu.dot_dimension_numbers<[2], [1], [1], [2], [0, 0, 0, 1, 1, 2], [0], [0]>} : vector<4x16x16xbf16>, vector<4x16x128xbf16>, vector<4x16x128xf32> -> vector<4x16x128xf32>
    "tpu.trace_stop"() : () -> ()
    %87 = vector.shape_cast %84 : vector<4x16x128xf32> to vector<64x128xf32>
    %88 = arith.truncf %87 : vector<64x128xf32> to vector<64x128xbf16>
    %89 = vector.shape_cast %86 : vector<4x16x128xf32> to vector<64x128xf32>
    %90 = arith.truncf %89 : vector<64x128xf32> to vector<64x128xbf16>
    %c0_42 = arith.constant 0 : index
    %c0_43 = arith.constant 0 : index
    %91 = vector.load %arg8[%c0_42, %c0_43] : memref<128x128xbf16, #tpu.memory_space<vmem>>, vector<128x128xbf16>
    %cst_44 = arith.constant dense<0.000000e+00> : vector<64x128xf32>
    %92 = tpu.matmul %3, %91, %cst_44 {dimension_numbers = #tpu.dot_dimension_numbers<[1], [0], [0], [1], [0, 0, 1, 1], [], []>} : vector<64x128xbf16>, vector<128x128xbf16>, vector<64x128xf32> -> vector<64x128xf32>
    %c0_45 = arith.constant 0 : index
    %c0_46 = arith.constant 0 : index
    %93 = vector.load %arg9[%c0_45, %c0_46] : memref<128x128xbf16, #tpu.memory_space<vmem>>, vector<128x128xbf16>
    %cst_47 = arith.constant dense<0.000000e+00> : vector<64x128xf32>
    %94 = tpu.matmul %88, %93, %cst_47 {dimension_numbers = #tpu.dot_dimension_numbers<[1], [0], [0], [1], [0, 0, 1, 1], [], []>} : vector<64x128xbf16>, vector<128x128xbf16>, vector<64x128xf32> -> vector<64x128xf32>
    %95 = arith.addf %92, %94 : vector<64x128xf32>
    %c0_48 = arith.constant 0 : index
    %c0_49 = arith.constant 0 : index
    %96 = vector.load %arg10[%c0_48, %c0_49] : memref<1x128xf32, #tpu.memory_space<vmem>>, vector<1x128xf32>
    %97 = vector.broadcast %96 : vector<1x128xf32> to vector<64x128xf32>
    %98 = arith.addf %95, %97 : vector<64x128xf32>
    %cst_50 = arith.constant 0.000000e+00 : f32
    %99 = vector.broadcast %cst_50 : f32 to vector<64x128xf32>
    %100 = arith.maximumf %98, %99 : vector<64x128xf32>
    %101 = arith.truncf %100 : vector<64x128xf32> to vector<64x128xbf16>
    %c0_51 = arith.constant 0 : index
    %c0_52 = arith.constant 0 : index
    %102 = vector.load %arg11[%c0_51, %c0_52] : memref<128x128xbf16, #tpu.memory_space<vmem>>, vector<128x128xbf16>
    %cst_53 = arith.constant dense<0.000000e+00> : vector<64x128xf32>
    %103 = tpu.matmul %101, %102, %cst_53 {dimension_numbers = #tpu.dot_dimension_numbers<[1], [0], [0], [1], [0, 0, 1, 1], [], []>} : vector<64x128xbf16>, vector<128x128xbf16>, vector<64x128xf32> -> vector<64x128xf32>
    %c0_54 = arith.constant 0 : index
    %c0_55 = arith.constant 0 : index
    %104 = vector.load %arg12[%c0_54, %c0_55] : memref<1x128xf32, #tpu.memory_space<vmem>>, vector<1x128xf32>
    %105 = vector.broadcast %104 : vector<1x128xf32> to vector<64x128xf32>
    %106 = arith.addf %103, %105 : vector<64x128xf32>
    %cst_56 = arith.constant 0.000000e+00 : f32
    %107 = vector.broadcast %cst_56 : f32 to vector<64x128xf32>
    %108 = arith.maximumf %106, %107 : vector<64x128xf32>
    %c0_57 = arith.constant 0 : index
    %c0_58 = arith.constant 0 : index
    %109 = vector.load %arg8[%c0_57, %c0_58] : memref<128x128xbf16, #tpu.memory_space<vmem>>, vector<128x128xbf16>
    %cst_59 = arith.constant dense<0.000000e+00> : vector<64x128xf32>
    %110 = tpu.matmul %7, %109, %cst_59 {dimension_numbers = #tpu.dot_dimension_numbers<[1], [0], [0], [1], [0, 0, 1, 1], [], []>} : vector<64x128xbf16>, vector<128x128xbf16>, vector<64x128xf32> -> vector<64x128xf32>
    %c0_60 = arith.constant 0 : index
    %c0_61 = arith.constant 0 : index
    %111 = vector.load %arg9[%c0_60, %c0_61] : memref<128x128xbf16, #tpu.memory_space<vmem>>, vector<128x128xbf16>
    %cst_62 = arith.constant dense<0.000000e+00> : vector<64x128xf32>
    %112 = tpu.matmul %90, %111, %cst_62 {dimension_numbers = #tpu.dot_dimension_numbers<[1], [0], [0], [1], [0, 0, 1, 1], [], []>} : vector<64x128xbf16>, vector<128x128xbf16>, vector<64x128xf32> -> vector<64x128xf32>
    %113 = arith.addf %110, %112 : vector<64x128xf32>
    %c0_63 = arith.constant 0 : index
    %c0_64 = arith.constant 0 : index
    %114 = vector.load %arg10[%c0_63, %c0_64] : memref<1x128xf32, #tpu.memory_space<vmem>>, vector<1x128xf32>
    %115 = vector.broadcast %114 : vector<1x128xf32> to vector<64x128xf32>
    %116 = arith.addf %113, %115 : vector<64x128xf32>
    %cst_65 = arith.constant 0.000000e+00 : f32
    %117 = vector.broadcast %cst_65 : f32 to vector<64x128xf32>
    %118 = arith.maximumf %116, %117 : vector<64x128xf32>
    %119 = arith.truncf %118 : vector<64x128xf32> to vector<64x128xbf16>
    %c0_66 = arith.constant 0 : index
    %c0_67 = arith.constant 0 : index
    %120 = vector.load %arg11[%c0_66, %c0_67] : memref<128x128xbf16, #tpu.memory_space<vmem>>, vector<128x128xbf16>
    %cst_68 = arith.constant dense<0.000000e+00> : vector<64x128xf32>
    %121 = tpu.matmul %119, %120, %cst_68 {dimension_numbers = #tpu.dot_dimension_numbers<[1], [0], [0], [1], [0, 0, 1, 1], [], []>} : vector<64x128xbf16>, vector<128x128xbf16>, vector<64x128xf32> -> vector<64x128xf32>
    %c0_69 = arith.constant 0 : index
    %c0_70 = arith.constant 0 : index
    %122 = vector.load %arg12[%c0_69, %c0_70] : memref<1x128xf32, #tpu.memory_space<vmem>>, vector<1x128xf32>
    %123 = vector.broadcast %122 : vector<1x128xf32> to vector<64x128xf32>
    %124 = arith.addf %121, %123 : vector<64x128xf32>
    %cst_71 = arith.constant 0.000000e+00 : f32
    %125 = vector.broadcast %cst_71 : f32 to vector<64x128xf32>
    %126 = arith.maximumf %124, %125 : vector<64x128xf32>
    %127 = vector.shape_cast %108 : vector<64x128xf32> to vector<4x16x128xf32>
    %cst_72 = arith.constant 0.000000e+00 : f32
    %128 = vector.shape_cast %48 : vector<1x16x1xi1> to vector<1x16x1xi1>
    %129 = vector.broadcast %128 : vector<1x16x1xi1> to vector<4x16x128xi1>
    %130 = vector.broadcast %cst_72 : f32 to vector<4x16x128xf32>
    %131 = arith.select %129, %127, %130 : vector<4x16x128xi1>, vector<4x16x128xf32>
    %cst_73 = arith.constant dense<0.000000e+00> : vector<4x128xf32>
    %132 = vector.multi_reduction <add>, %131, %cst_73 [1] : vector<4x16x128xf32> to vector<4x128xf32>
    %133 = vector.shape_cast %126 : vector<64x128xf32> to vector<4x16x128xf32>
    %cst_74 = arith.constant 0.000000e+00 : f32
    %134 = vector.shape_cast %51 : vector<1x16x1xi1> to vector<1x16x1xi1>
    %135 = vector.broadcast %134 : vector<1x16x1xi1> to vector<4x16x128xi1>
    %136 = vector.broadcast %cst_74 : f32 to vector<4x16x128xf32>
    %137 = arith.select %135, %133, %136 : vector<4x16x128xi1>, vector<4x16x128xf32>
    %cst_75 = arith.constant dense<0.000000e+00> : vector<4x128xf32>
    %138 = vector.multi_reduction <add>, %137, %cst_75 [1] : vector<4x16x128xf32> to vector<4x128xf32>
    %139 = arith.truncf %132 : vector<4x128xf32> to vector<4x128xbf16>
    %c0_76 = arith.constant 0 : index
    %c0_77 = arith.constant 0 : index
    %140 = vector.load %arg13[%c0_76, %c0_77] : memref<128x128xbf16, #tpu.memory_space<vmem>>, vector<128x128xbf16>
    %cst_78 = arith.constant dense<0.000000e+00> : vector<4x128xf32>
    %141 = tpu.matmul %139, %140, %cst_78 {dimension_numbers = #tpu.dot_dimension_numbers<[1], [0], [0], [1], [0, 0, 1, 1], [], []>} : vector<4x128xbf16>, vector<128x128xbf16>, vector<4x128xf32> -> vector<4x128xf32>
    %142 = arith.truncf %138 : vector<4x128xf32> to vector<4x128xbf16>
    %c0_79 = arith.constant 0 : index
    %c0_80 = arith.constant 0 : index
    %143 = vector.load %arg14[%c0_79, %c0_80] : memref<128x128xbf16, #tpu.memory_space<vmem>>, vector<128x128xbf16>
    %cst_81 = arith.constant dense<0.000000e+00> : vector<4x128xf32>
    %144 = tpu.matmul %142, %143, %cst_81 {dimension_numbers = #tpu.dot_dimension_numbers<[1], [0], [0], [1], [0, 0, 1, 1], [], []>} : vector<4x128xbf16>, vector<128x128xbf16>, vector<4x128xf32> -> vector<4x128xf32>
    %145 = arith.addf %141, %144 : vector<4x128xf32>
    %c0_82 = arith.constant 0 : index
    %c0_83 = arith.constant 0 : index
    %146 = vector.load %arg15[%c0_82, %c0_83] : memref<1x128xf32, #tpu.memory_space<vmem>>, vector<1x128xf32>
    %147 = vector.broadcast %146 : vector<1x128xf32> to vector<4x128xf32>
    %148 = arith.addf %145, %147 : vector<4x128xf32>
    %cst_84 = arith.constant 0.000000e+00 : f32
    %149 = vector.broadcast %cst_84 : f32 to vector<4x128xf32>
    %150 = arith.maximumf %148, %149 : vector<4x128xf32>
    %151 = arith.truncf %150 : vector<4x128xf32> to vector<4x128xbf16>
    %c0_85 = arith.constant 0 : index
    %c0_86 = arith.constant 0 : index
    %152 = vector.load %arg16[%c0_85, %c0_86] : memref<128x128xbf16, #tpu.memory_space<vmem>>, vector<128x128xbf16>
    %cst_87 = arith.constant dense<0.000000e+00> : vector<4x128xf32>
    %153 = tpu.matmul %151, %152, %cst_87 {dimension_numbers = #tpu.dot_dimension_numbers<[1], [0], [0], [1], [0, 0, 1, 1], [], []>} : vector<4x128xbf16>, vector<128x128xbf16>, vector<4x128xf32> -> vector<4x128xf32>
    %c0_88 = arith.constant 0 : index
    %c0_89 = arith.constant 0 : index
    %154 = vector.load %arg17[%c0_88, %c0_89] : memref<1x128xf32, #tpu.memory_space<vmem>>, vector<1x128xf32>
    %155 = vector.broadcast %154 : vector<1x128xf32> to vector<4x128xf32>
    %156 = arith.addf %153, %155 : vector<4x128xf32>
    %cst_90 = arith.constant 0.000000e+00 : f32
    %157 = vector.broadcast %cst_90 : f32 to vector<4x128xf32>
    %158 = arith.maximumf %156, %157 : vector<4x128xf32>
    %159 = arith.truncf %158 : vector<4x128xf32> to vector<4x128xbf16>
    %c0_91 = arith.constant 0 : index
    %c0_92 = arith.constant 0 : index
    %160 = vector.load %arg18[%c0_91, %c0_92] : memref<128x128xbf16, #tpu.memory_space<vmem>>, vector<128x128xbf16>
    %cst_93 = arith.constant dense<0.000000e+00> : vector<4x128xf32>
    %161 = tpu.matmul %159, %160, %cst_93 {dimension_numbers = #tpu.dot_dimension_numbers<[1], [0], [0], [1], [0, 0, 1, 1], [], []>} : vector<4x128xbf16>, vector<128x128xbf16>, vector<4x128xf32> -> vector<4x128xf32>
    %c0_94 = arith.constant 0 : index
    %c0_95 = arith.constant 0 : index
    %162 = vector.load %arg19[%c0_94, %c0_95] : memref<1x128xf32, #tpu.memory_space<vmem>>, vector<1x128xf32>
    %163 = vector.broadcast %162 : vector<1x128xf32> to vector<4x128xf32>
    %164 = arith.addf %161, %163 : vector<4x128xf32>
    %cst_96 = arith.constant dense<0xFF800000> : vector<4xf32>
    %165 = vector.multi_reduction <maximumf>, %164, %cst_96 [1] : vector<4x128xf32> to vector<4xf32>
    %166 = vector.shape_cast %165 : vector<4xf32> to vector<4x1xf32>
    %167 = vector.broadcast %166 : vector<4x1xf32> to vector<4x128xf32>
    %168 = arith.subf %164, %167 : vector<4x128xf32>
    %169 = math.exp %168 : vector<4x128xf32>
    %cst_97 = arith.constant dense<0.000000e+00> : vector<4xf32>
    %170 = vector.multi_reduction <add>, %169, %cst_97 [1] : vector<4x128xf32> to vector<4xf32>
    %171 = vector.shape_cast %170 : vector<4xf32> to vector<4x1xf32>
    %172 = math.log %171 : vector<4x1xf32>
    %173 = arith.addf %172, %166 : vector<4x1xf32>
    %174 = vector.broadcast %173 : vector<4x1xf32> to vector<4x128xf32>
    %175 = arith.subf %164, %174 : vector<4x128xf32>
    %c0_98 = arith.constant 0 : index
    %c0_99 = arith.constant 0 : index
    %176 = vector.load %arg20[%c0_98, %c0_99] : memref<4x128xf32, #tpu.memory_space<vmem>>, vector<4x128xf32>
    tpu.vector_store %arg20[%c0_98, %c0_99], %175 {strides = array<i32>} : memref<4x128xf32, #tpu.memory_space<vmem>>, vector<4x128xf32>,
    return
  }
  func.func @transform_0(%arg0: i32) -> (i32, i32) {
    %c0_i32 = arith.constant 0 : i32
    %c0_i32_0 = arith.constant 0 : i32
    return %arg0, %c0_i32 : i32, i32
  }
  func.func @transform_1(%arg0: i32) -> (i32, i32) {
    %c0_i32 = arith.constant 0 : i32
    %c0_i32_0 = arith.constant 0 : i32
    return %arg0, %c0_i32 : i32, i32
  }
  func.func @transform_2(%arg0: i32) -> (i32, i32) {
    %c0_i32 = arith.constant 0 : i32
    %c0_i32_0 = arith.constant 0 : i32
    %c0_i32_1 = arith.constant 0 : i32
    return %c0_i32, %c0_i32_0 : i32, i32
  }
  func.func @transform_3(%arg0: i32) -> (i32, i32) {
    %c0_i32 = arith.constant 0 : i32
    %c0_i32_0 = arith.constant 0 : i32
    %c0_i32_1 = arith.constant 0 : i32
    return %c0_i32, %c0_i32_0 : i32, i32
  }
  func.func @transform_4(%arg0: i32) -> (i32, i32) {
    %c0_i32 = arith.constant 0 : i32
    %c0_i32_0 = arith.constant 0 : i32
    %c0_i32_1 = arith.constant 0 : i32
    return %c0_i32, %c0_i32_0 : i32, i32
  }
  func.func @transform_5(%arg0: i32) -> (i32, i32) {
    %c0_i32 = arith.constant 0 : i32
    %c0_i32_0 = arith.constant 0 : i32
    %c0_i32_1 = arith.constant 0 : i32
    return %c0_i32, %c0_i32_0 : i32, i32
  }
  func.func @transform_6(%arg0: i32) -> (i32, i32) {
    %c0_i32 = arith.constant 0 : i32
    %c0_i32_0 = arith.constant 0 : i32
    %c0_i32_1 = arith.constant 0 : i32
    return %c0_i32, %c0_i32_0 : i32, i32
  }
  func.func @transform_7(%arg0: i32) -> (i32, i32) {
    %c0_i32 = arith.constant 0 : i32
    %c0_i32_0 = arith.constant 0 : i32
    %c0_i32_1 = arith.constant 0 : i32
    return %c0_i32, %c0_i32_0 : i32, i32
  }
  func.func @transform_8(%arg0: i32) -> (i32, i32) {
    %c0_i32 = arith.constant 0 : i32
    %c0_i32_0 = arith.constant 0 : i32
    %c0_i32_1 = arith.constant 0 : i32
    return %c0_i32, %c0_i32_0 : i32, i32
  }
  func.func @transform_9(%arg0: i32) -> (i32, i32) {
    %c0_i32 = arith.constant 0 : i32
    %c0_i32_0 = arith.constant 0 : i32
    %c0_i32_1 = arith.constant 0 : i32
    return %c0_i32, %c0_i32_0 : i32, i32
  }
  func.func @transform_10(%arg0: i32) -> (i32, i32) {
    %c0_i32 = arith.constant 0 : i32
    %c0_i32_0 = arith.constant 0 : i32
    %c0_i32_1 = arith.constant 0 : i32
    return %c0_i32, %c0_i32_0 : i32, i32
  }
  func.func @transform_11(%arg0: i32) -> (i32, i32) {
    %c0_i32 = arith.constant 0 : i32
    %c0_i32_0 = arith.constant 0 : i32
    %c0_i32_1 = arith.constant 0 : i32
    return %c0_i32, %c0_i32_0 : i32, i32
  }
  func.func @transform_12(%arg0: i32) -> (i32, i32) {
    %c0_i32 = arith.constant 0 : i32
    %c0_i32_0 = arith.constant 0 : i32
    %c0_i32_1 = arith.constant 0 : i32
    return %c0_i32, %c0_i32_0 : i32, i32
  }
  func.func @transform_13(%arg0: i32) -> (i32, i32) {
    %c0_i32 = arith.constant 0 : i32
    %c0_i32_0 = arith.constant 0 : i32
    %c0_i32_1 = arith.constant 0 : i32
    return %c0_i32, %c0_i32_0 : i32, i32
  }
  func.func @transform_14(%arg0: i32) -> (i32, i32) {
    %c0_i32 = arith.constant 0 : i32
    %c0_i32_0 = arith.constant 0 : i32
    %c0_i32_1 = arith.constant 0 : i32
    return %c0_i32, %c0_i32_0 : i32, i32
  }
  func.func @transform_15(%arg0: i32) -> (i32, i32) {
    %c0_i32 = arith.constant 0 : i32
    %c0_i32_0 = arith.constant 0 : i32
    %c0_i32_1 = arith.constant 0 : i32
    return %c0_i32, %c0_i32_0 : i32, i32
  }
  func.func @transform_16(%arg0: i32) -> (i32, i32) {
    %c0_i32 = arith.constant 0 : i32
    %c0_i32_0 = arith.constant 0 : i32
    %c0_i32_1 = arith.constant 0 : i32
    return %c0_i32, %c0_i32_0 : i32, i32
  }
  func.func @transform_17(%arg0: i32) -> (i32, i32) {
    %c0_i32 = arith.constant 0 : i32
    %c0_i32_0 = arith.constant 0 : i32
    %c0_i32_1 = arith.constant 0 : i32
    return %c0_i32, %c0_i32_0 : i32, i32
  }
  func.func @transform_18(%arg0: i32) -> (i32, i32) {
    %c0_i32 = arith.constant 0 : i32
    %c0_i32_0 = arith.constant 0 : i32
    %c0_i32_1 = arith.constant 0 : i32
    return %c0_i32, %c0_i32_0 : i32, i32
  }
  func.func @transform_19(%arg0: i32) -> (i32, i32) {
    %c0_i32 = arith.constant 0 : i32
    %c0_i32_0 = arith.constant 0 : i32
    return %arg0, %c0_i32 : i32, i32
  }
}

</mosaic_0001>

<bundles_post_ra>
// kernel: tpu_custom_call.1
= control target key start
LH: loop header
LB: loop body
LE: loop exit
PB: predicated region body
PF: predicated region fallthrough
CT: control target
= control target key end

     0   :  { %s3703_s0 = inlined_call_operand.hbm [shape: bf16[64,128], index: 0, kind: input, shape index: {}]   ;;  %s3704_s1 = inlined_call_operand.hbm [shape: bf16[64,128], index: 1, kind: input, shape index: {}]   ;;  %s3705_s2 = inlined_call_operand.hbm [shape: bf16[128,128], index: 2, kind: input, shape index: {}]   ;;  %s3706_s3 = inlined_call_operand.hbm [shape: bf16[128,128], index: 3, kind: input, shape index: {}]   ;;  %s3707_s4 = inlined_call_operand.vmem [shape: f32[1,128], index: 4, kind: input, shape index: {}]   ;;  %s3708_s5 = inlined_call_operand.hbm [shape: bf16[128,128], index: 5, kind: input, shape index: {}]   ;;  %s3709_s6 = inlined_call_operand.vmem [shape: f32[1,128], index: 6, kind: input, shape index: {}]   ;;  %s3710_s7 = inlined_call_operand.hbm [shape: bf16[128,128], index: 7, kind: input, shape index: {}]   ;;  %s3711_s8 = inlined_call_operand.hbm [shape: bf16[128,128], index: 8, kind: input, shape index: {}]   ;;  %s3712_s9 = inlined_call_operand.vmem [shape: f32[1,128], index: 9, kind: input, shape index: {}]   ;;  %s3713_s10 = inlined_call_operand.hbm [shape: bf16[128,128], index: 10, kind: input, shape index: {}]   ;;  %s3714_s11 = inlined_call_operand.vmem [shape: f32[1,128], index: 11, kind: input, shape index: {}]   ;;  %s3715_s12 = inlined_call_operand.hbm [shape: bf16[128,128], index: 12, kind: input, shape index: {}]   ;;  %s3716_s13 = inlined_call_operand.hbm [shape: bf16[128,128], index: 13, kind: input, shape index: {}]   ;;  %s3717_s14 = inlined_call_operand.vmem [shape: f32[1,128], index: 14, kind: input, shape index: {}]   ;;  %s3718_s15 = inlined_call_operand.hbm [shape: bf16[128,128], index: 15, kind: input, shape index: {}]   ;;  %s3719_s16 = inlined_call_operand.vmem [shape: f32[1,128], index: 16, kind: input, shape index: {}]   ;;  %s3720_s17 = inlined_call_operand.hbm [shape: bf16[128,128], index: 17, kind: input, shape index: {}]   ;;  %s3721_s18 = inlined_call_operand.vmem [shape: f32[1,128], index: 18, kind: input, shape index: {}]   ;;  %s3722_s19 = inlined_call_operand.hbm [shape: f32[4,128], index: 19, kind: output, shape index: {}]  }
   0x1   :  { %3723 = sst [smem:[#allocation31_spill]] %s3703_s0 }
   0x2   :  { %3724 = sst [smem:[#allocation32_spill]] %s3704_s1 }
   0x3   :  { %3725 = sst [smem:[#allocation33_spill]] %s3705_s2 }
   0x4   :  { %3726 = sst [smem:[#allocation34_spill]] %s3706_s3 }
   0x5   :  { %24 = vsyncpa [#allocation3], 0 }
   0x6   :  { %25 = vsyncpa [#allocation6], 0 }
   0x7   :  { %26 = vsyncpa [#allocation9], 0 }
   0x8   :  { %27 = vsyncpa [#allocation12], 0 }
   0x9   :  { %28 = vsyncpa [#allocation15], 0 }
   0xa   :  { %29 = vsyncpa [#allocation18], 0 }
   0xb   :  { %30 = vsyncpa [#allocation21], 0 }
   0xc   :  { %31 = vsyncpa [#allocation4], 0  ;;  %s3727_s20 = sld [smem:[#allocation32_spill]]  ;;  %s3236_s1 = smov [#allocation5]  }
   0xd   :  { %s51_s22 = sshll.u32 %s3236_s1, 4  ;;  %s3728_s24 = sld [smem:[#allocation34_spill]]  ;;  %s52_s22 = int_to_ptr.vmem [resolvable:$true] %s51_s22 }
   0xe   :  { %s3237_s3 = smov 64   ;;  %s3238_s26 = smov 4  }
   0xf   :  { %s3239_s27 = smov [#allocation8]   ;;  %s105_s30 = sshll.u32 %s3710_s7, 4  ;;  %s106_s30 = int_to_ptr.hbm [resolvable:$true] %s105_s30 }
  0x10   :  { %s77_s28 = sshll.u32 %s3239_s27, 4  ;;  %s133_s2 = sshll.u32 %s3713_s10, 4  ;;  %s78_s28 = int_to_ptr.vmem [resolvable:$true] %s77_s28  ;;  %s134_s2 = int_to_ptr.hbm [resolvable:$true] %s133_s2 }
  0x11   :  { %s3240_s23 = smov [#allocation11]   ;;  %s161_s29 = sshll.u32 %s3716_s13, 4  ;;  %s162_s29 = int_to_ptr.hbm [resolvable:$true] %s161_s29 }
  0x12   :  { %s49_s21 = sshll.u32 %s3727_s20, 4  ;;  %s3242_s20 = smov [#allocation17]   ;;  %s50_s21 = int_to_ptr.hbm [resolvable:$true] %s49_s21 }
  0x13   :  { %s75_s25 = sshll.u32 %s3728_s24, 4  ;;  %s107_s24 = sshll.u32 %s3240_s23, 4  ;;  %s76_s25 = int_to_ptr.hbm [resolvable:$true] %s75_s25  ;;  %s108_s24 = int_to_ptr.vmem [resolvable:$true] %s107_s24 }
  0x14   :  { %57 = dma.hbm_to_vmem [thread:$0]  %s50_s21, 512, %s52_s22, [#allocation6], %s3237_s3, %s3237_s3, %s3238_s26  }
  0x15   :  { %83 = dma.hbm_to_vmem [thread:$0]  %s76_s25, 1024, %s78_s28, [#allocation9], %s3237_s3, %s3237_s3, %s3238_s26  }
  0x16   :  { %113 = dma.hbm_to_vmem [thread:$0]  %s106_s30, 1024, %s108_s24, [#allocation12], %s3237_s3, %s3237_s3, %s3238_s26  }
  0x17   :  { %s3241_s21 = smov [#allocation14]   ;;  %s3729_s28 = sld [smem:[#allocation31_spill]] }
  0x18   :  { %s135_s7 = sshll.u32 %s3241_s21, 4  ;;  %s163_s1 = sshll.u32 %s3242_s20, 4  ;;  %s136_s7 = int_to_ptr.vmem [resolvable:$true] %s135_s7  ;;  %s164_s1 = int_to_ptr.vmem [resolvable:$true] %s163_s1 }
  0x19   :  { %141 = dma.hbm_to_vmem [thread:$0]  %s134_s2, 1024, %s136_s7, [#allocation15], %s3237_s3, %s3237_s3, %s3238_s26  }
  0x1a   :  { %169 = dma.hbm_to_vmem [thread:$0]  %s162_s29, 1024, %s164_s1, [#allocation18], %s3237_s3, %s3237_s3, %s3238_s26  }
  0x1b   :  { %s3243_s30 = smov [#allocation2]   ;;  %s3730_s21 = sld [smem:[#allocation33_spill]] }
  0x1c   :  { %s38_s13 = sshll.u32 %s3243_s30, 4  ;;  %s90_s27 = sshll.u32 %s3708_s5, 4  ;;  %s39_s13 = int_to_ptr.vmem [resolvable:$true] %s38_s13  ;;  %s91_s27 = int_to_ptr.hbm [resolvable:$true] %s90_s27 }
  0x1d   :  { %s36_s0 = sshll.u32 %s3729_s28, 4  ;;  %s3244_s10 = smov [#allocation7]   ;;  %s37_s0 = int_to_ptr.hbm [resolvable:$true] %s36_s0 }
  0x1e   :  { %44 = dma.hbm_to_vmem [thread:$0]  %s37_s0, 512, %s39_s13, [#allocation3], %s3237_s3, %s3237_s3, %s3238_s26  }
  0x1f   :  { %s64_s25 = sshll.u32 %s3244_s10, 4  ;;  %s3245_s29 = smov [#allocation10]   ;;  %s65_s25 = int_to_ptr.vmem [resolvable:$true] %s64_s25 }
  0x20   :  { %s92_s28 = sshll.u32 %s3245_s29, 4  ;;  %s118_s30 = sshll.u32 %s3711_s8, 4  ;;  %s93_s28 = int_to_ptr.vmem [resolvable:$true] %s92_s28  ;;  %s119_s30 = int_to_ptr.hbm [resolvable:$true] %s118_s30 }
  0x21   :  { %s62_s22 = sshll.u32 %s3730_s21, 4  ;;  %s148_s13 = sshll.u32 %s3715_s12, 4  ;;  %s63_s22 = int_to_ptr.hbm [resolvable:$true] %s62_s22  ;;  %s149_s13 = int_to_ptr.hbm [resolvable:$true] %s148_s13 }
  0x22   :  { %70 = dma.hbm_to_vmem [thread:$0]  %s63_s22, 1024, %s65_s25, [#allocation6], %s3237_s3, %s3237_s3, %s3238_s26  }
  0x23   :  { %98 = dma.hbm_to_vmem [thread:$0]  %s91_s27, 1024, %s93_s28, [#allocation9], %s3237_s3, %s3237_s3, %s3238_s26  }
  0x24   :  { %s3246_s23 = smov [#allocation13]   ;;  %s3247_s21 = smov [#allocation16]  }
  0x25   :  { %s120_s24 = sshll.u32 %s3246_s23, 4  ;;  %s150_s8 = sshll.u32 %s3247_s21, 4  ;;  %s121_s24 = int_to_ptr.vmem [resolvable:$true] %s120_s24  ;;  %s151_s8 = int_to_ptr.vmem [resolvable:$true] %s150_s8 }
  0x26   :  { %126 = dma.hbm_to_vmem [thread:$0]  %s119_s30, 1024, %s121_s24, [#allocation12], %s3237_s3, %s3237_s3, %s3238_s26  }
  0x27   :  { %s176_s7 = sshll.u32 %s3718_s15, 4  ;;  %s191_s10 = sshll.u32 %s3720_s17, 4  ;;  %s177_s7 = int_to_ptr.hbm [resolvable:$true] %s176_s7  ;;  %s192_s10 = int_to_ptr.hbm [resolvable:$true] %s191_s10 }
  0x28   :  { %156 = dma.hbm_to_vmem [thread:$0]  %s149_s13, 1024, %s151_s8, [#allocation15], %s3237_s3, %s3237_s3, %s3238_s26  }
  0x29   :  { %s3248_s25 = smov [#allocation19]   ;;  %s3249_s28 = smov [#allocation20]  }
  0x2a   :  { %s178_s29 = sshll.u32 %s3248_s25, 4  ;;  %s193_s15 = sshll.u32 %s3249_s28, 4  ;;  %s179_s29 = int_to_ptr.vmem [resolvable:$true] %s178_s29  ;;  %s194_s15 = int_to_ptr.vmem [resolvable:$true] %s193_s15 }
  0x2b   :  { %184 = dma.hbm_to_vmem [thread:$0]  %s177_s7, 1024, %s179_s29, [#allocation18], %s3237_s3, %s3237_s3, %s3238_s26  }
  0x2c   :  { %199 = dma.hbm_to_vmem [thread:$0]  %s192_s10, 1024, %s194_s15, [#allocation21], %s3237_s3, %s3237_s3, %s3238_s26  }
  0x2d   :  { %3220 = dma.done.wait [#allocation3], 512  }
  0x2e   :  { %3221 = vsyncadd [#allocation3], 4294966784 }
  0x2f   :  { %3222 = dma.done.wait [#allocation6], 1536  }
  0x30   :  { %3223 = vsyncadd [#allocation6], 4294965760 }
  0x31   :  { %3224 = dma.done.wait [#allocation9], 2048  }
  0x32   :  { %3225 = vsyncadd [#allocation9], 4294965248 }
  0x33   :  { %3226 = dma.done.wait [#allocation12], 2048  }
  0x34   :  { %3227 = vsyncadd [#allocation12], 4294965248 }
  0x35   :  { %3228 = dma.done.wait [#allocation15], 2048  }
  0x36   :  { %3229 = vsyncadd [#allocation15], 4294965248 }
  0x37   :  { %3230 = dma.done.wait [#allocation18], 2048  }
  0x38   :  { %3231 = vsyncadd [#allocation18], 4294965248 }
  0x39   :  { %3232 = dma.done.wait [#allocation21], 1024  }
  0x3a   :  { %3233 = vsyncadd [#allocation21], 4294966272  ;;  %v2747_v0 = vld [vmem:[#allocation7 + $0x38] sm:$0xff]  ;;  %v2746_v1 = vld [vmem:[#allocation7 + $0x30] sm:$0xff]  ;;  %vm933_vm1 = vcmask 130048   ;;  %vm2024_vm2 = vcmask 1041409  }
  0x3b   :  { %347 = vmatpush.bf16.msra.mxu0 %v2747_v0  ;;  %416 = vmatpush.bf16.msra.mxu1 %v2747_v0  ;;  %v2745_v2 = vld [vmem:[#allocation7 + $0x28] sm:$0xff]  ;;  %v2744_v3 = vld [vmem:[#allocation7 + $0x20] sm:$0xff]  ;;  %v2743_v4 = vld [vmem:[#allocation7 + $0x18] sm:$0xff]  ;;  %vm2026_vm3 = vcmask 1042434   ;;  %vm2028_vm4 = vcmask 1043459   ;;  %vm2338_vm6 = vcmask 1043456  }
  0x3c   :  { %v2742_v5 = vld [vmem:[#allocation7 + $0x10] sm:$0xff]  ;;  %v2741_v6 = vld [vmem:[#allocation7 + $0x8] sm:$0xff]  ;;  %v2740_v7 = vld [vmem:[#allocation7] sm:$0xff]  ;;  %s2360_s21 = sshll.u32 %s3722_s19, 4  ;;  %s2361_s21 = int_to_ptr.hbm [resolvable:$true] %s2360_s21 }
  0x3d   :  { %v2736_v8 = vld [vmem:[#allocation2] sm:$0xff]  ;;  %v2737_v10 = vld [vmem:[#allocation2 + $0x8] sm:$0xff]  ;;  %v2759_v12 = vld [vmem:[#allocation8 + $0x38] sm:$0xff] }
  0x3e   :  { %v2748_v9 = vld [vmem:[#allocation5] sm:$0xff]  ;;  %v2749_v11 = vld [vmem:[#allocation5 + $0x8] sm:$0xff]  ;;  %545 = vmatpush.bf16.msra.mxu2 %v2759_v12  ;;  %v2758_v13 = vld [vmem:[#allocation8 + $0x30] sm:$0xff] }
  0x3f   :  { %348 = vmatpush.bf16.msra.mxu0 %v2746_v1  ;;  %417 = vmatpush.bf16.msra.mxu1 %v2746_v1  ;;  %v2757_v14 = vld [vmem:[#allocation8 + $0x28] sm:$0xff]  ;;  %v2756_v15 = vld [vmem:[#allocation8 + $0x20] sm:$0xff]  ;;  %v2738_v16 = vld [vmem:[#allocation2 + $0x10] sm:$0xff] }
  0x40   :  { %v2750_v17 = vld [vmem:[#allocation5 + $0x10] sm:$0xff]  ;;  %v2739_v18 = vld [vmem:[#allocation2 + $0x18] sm:$0xff]  ;;  %v2753_v24 = vld [vmem:[#allocation8 + $0x8] sm:$0xff] }
  0x41   :  { %v2751_v19 = vld [vmem:[#allocation5 + $0x18] sm:$0xff]  ;;  %v2754_v22 = vld [vmem:[#allocation8 + $0x10] sm:$0xff]  ;;  %v2765_v25 = vld [vmem:[#allocation10 + $0x28] sm:$0xff] }
  0x42   :  { %546 = vmatpush.bf16.msra.mxu2 %v2758_v13  ;;  %v2755_v20 = vld [vmem:[#allocation8 + $0x18] sm:$0xff]  ;;  %v2766_v23 = vld [vmem:[#allocation10 + $0x30] sm:$0xff]  ;;  %v2752_v26 = vld [vmem:[#allocation8] sm:$0xff] }
  0x43   :  { %349 = vmatpush.bf16.msra.mxu0 %v2745_v2  ;;  %418 = vmatpush.bf16.msra.mxu1 %v2745_v2  ;;  %v2767_v21 = vld [vmem:[#allocation10 + $0x38] sm:$0xff]  ;;  %v2764_v27 = vld [vmem:[#allocation10 + $0x20] sm:$0xff]  ;;  %v2762_v29 = vld [vmem:[#allocation10 + $0x10] sm:$0xff] }
  0x44   :  { %654 = vmatpush.bf16.msra.mxu3 %v2767_v21  ;;  %v2763_v28 = vld [vmem:[#allocation10 + $0x18] sm:$0xff]  ;;  %v2761_v30 = vld [vmem:[#allocation10 + $0x8] sm:$0xff]  ;;  %v2760_v31 = vld [vmem:[#allocation10] sm:$0xff] }
  0x46   :  { %547 = vmatpush.bf16.msra.mxu2 %v2757_v14 }
  0x47   :  { %350 = vmatpush.bf16.msra.mxu0 %v2744_v3  ;;  %419 = vmatpush.bf16.msra.mxu1 %v2744_v3 }
  0x48   :  { %655 = vmatpush.bf16.msra.mxu3 %v2766_v23 }
  0x4a   :  { %548 = vmatpush.bf16.msra.mxu2 %v2756_v15 }
  0x4b   :  { %351 = vmatpush.bf16.msra.mxu0 %v2743_v4  ;;  %420 = vmatpush.bf16.msra.mxu1 %v2743_v4 }
  0x4c   :  { %656 = vmatpush.bf16.msra.mxu3 %v2765_v25 }
  0x4e   :  { %549 = vmatpush.bf16.msra.mxu2 %v2755_v20 }
  0x4f   :  { %352 = vmatpush.bf16.msra.mxu0 %v2742_v5  ;;  %421 = vmatpush.bf16.msra.mxu1 %v2742_v5 }
  0x50   :  { %657 = vmatpush.bf16.msra.mxu3 %v2764_v27 }
  0x52   :  { %550 = vmatpush.bf16.msra.mxu2 %v2754_v22 }
  0x53   :  { %353 = vmatpush.bf16.msra.mxu0 %v2741_v6  ;;  %422 = vmatpush.bf16.msra.mxu1 %v2741_v6 }
  0x54   :  { %658 = vmatpush.bf16.msra.mxu3 %v2763_v28 }
  0x56   :  { %551 = vmatpush.bf16.msra.mxu2 %v2753_v24 }
  0x57   :  { %354 = vmatpush.bf16.msra.mxu0 %v2740_v7  ;;  %423 = vmatpush.bf16.msra.mxu1 %v2740_v7 }
  0x58   :  { %659 = vmatpush.bf16.msra.mxu3 %v2762_v29 }
  0x5a   :  { %355 = vmatmul.bf16.vlgmr.msra.gmra.mxu0 %v2736_v8  ;;  %424 = vmatmul.bf16.vlgmr.msra.gmra.mxu1 %v2748_v9 }
  0x5b   :  { %723 = vmatpush.bf16.msrb.mxu0 %v2759_v12  ;;  %764 = vmatpush.bf16.msrb.mxu1 %v2767_v21 }
  0x5c   :  { %552 = vmatpush.bf16.msra.mxu2 %v2752_v26  ;;  %660 = vmatpush.bf16.msra.mxu3 %v2761_v30 }
  0x5f   :  { %724 = vmatpush.bf16.msrb.mxu0 %v2758_v13  ;;  %765 = vmatpush.bf16.msrb.mxu1 %v2766_v23 }
  0x60   :  { %661 = vmatpush.bf16.msra.mxu3 %v2760_v31 }
  0x63   :  { %725 = vmatpush.bf16.msrb.mxu0 %v2757_v14  ;;  %766 = vmatpush.bf16.msrb.mxu1 %v2765_v25  ;;  %v2841_v25 = vld [vmem:[%s3707_s4] ss:$0 sm:$0xff] }
  0x67   :  { %726 = vmatpush.bf16.msrb.mxu0 %v2756_v15  ;;  %767 = vmatpush.bf16.msrb.mxu1 %v2764_v27 }
  0x6a   :  { %360 = vmatmul.bf16.gmra.mxu0 %v2737_v10  ;;  %429 = vmatmul.bf16.gmra.mxu1 %v2749_v11 }
  0x6b   :  { %727 = vmatpush.bf16.msrb.mxu0 %v2755_v20  ;;  %768 = vmatpush.bf16.msrb.mxu1 %v2763_v28 }
  0x6f   :  { %728 = vmatpush.bf16.msrb.mxu0 %v2754_v22  ;;  %769 = vmatpush.bf16.msrb.mxu1 %v2762_v29 }
  0x73   :  { %729 = vmatpush.bf16.msrb.mxu0 %v2753_v24  ;;  %770 = vmatpush.bf16.msrb.mxu1 %v2761_v30 }
  0x77   :  { %730 = vmatpush.bf16.msrb.mxu0 %v2752_v26  ;;  %771 = vmatpush.bf16.msrb.mxu1 %v2760_v31 }
  0x7a   :  { %365 = vmatmul.bf16.gmra.mxu0 %v2738_v16  ;;  %434 = vmatmul.bf16.gmra.mxu1 %v2750_v17 }
  0x8a   :  { %370 = vmatmul.bf16.gmra.mxu0 %v2739_v18  ;;  %439 = vmatmul.bf16.gmra.mxu1 %v2751_v19 }
  0xd7   :  { %v356_v32 = vpop.f32.mrf.mxu0  ;;  %v425_v33 = vpop.f32.mrf.mxu1 }
  0xd8   :  { %v376_v34 = vpack.c.bf16 %v356_v32, %v356_v32  ;;  %v445_v35 = vpack.c.bf16 %v425_v33, %v425_v33 }
  0xda   :  { %v481_v40 = vunpack.c.l.b16 %v376_v34  ;;  %v707_v41 = vunpack.c.l.b16 %v445_v35 }
  0xdf   :  { %v358_v36 = vpop.f32.mrf.mxu0  ;;  %v427_v37 = vpop.f32.mrf.mxu1 }
  0xe0   :  { %v377_v38 = vpack.c.bf16 %v358_v36, %v358_v36  ;;  %v446_v39 = vpack.c.bf16 %v427_v37, %v427_v37 }
  0xe2   :  { %v482_v42 = vunpack.c.l.b16 %v377_v38  ;;  %v708_v43 = vunpack.c.l.b16 %v446_v39 }
  0xe4   :  { %v3424_v44 = vpack.c.b16 %v482_v42, %v481_v40  ;;  %v3426_v45 = vpack.c.b16 %v708_v43, %v707_v41 }
  0xe6   :  { %553 = vmatmul.bf16.vlgmr.msra.gmra.mxu2 %v3424_v44  ;;  %731 = vmatmul.bf16.vlgmr.msrb.gmra.mxu0 %v3426_v45 }
  0xe7   :  { %v361_v46 = vpop.f32.mrf.mxu0  ;;  %v430_v47 = vpop.f32.mrf.mxu1  ;;  %1389 = vmatpush.bf16.msra.mxu0 %v3424_v44 }
  0xe8   :  { %v378_v48 = vpack.c.bf16 %v361_v46, %v361_v46  ;;  %v447_v49 = vpack.c.bf16 %v430_v47, %v430_v47 }
  0xea   :  { %v483_v54 = vunpack.c.l.b16 %v378_v48  ;;  %v709_v55 = vunpack.c.l.b16 %v447_v49 }
  0xef   :  { %v363_v50 = vpop.f32.mrf.mxu0  ;;  %v432_v51 = vpop.f32.mrf.mxu1 }
  0xf0   :  { %v379_v52 = vpack.c.bf16 %v363_v50, %v363_v50  ;;  %v448_v53 = vpack.c.bf16 %v432_v51, %v432_v51 }
  0xf2   :  { %v484_v56 = vunpack.c.l.b16 %v379_v52  ;;  %v710_v57 = vunpack.c.l.b16 %v448_v53 }
  0xf4   :  { %v3431_v58 = vpack.c.b16 %v484_v56, %v483_v54  ;;  %v3433_v59 = vpack.c.b16 %v710_v57, %v709_v55 }
  0xf6   :  { %558 = vmatmul.bf16.gmra.mxu2 %v3431_v58  ;;  %736 = vmatmul.bf16.gmra.mxu0 %v3433_v59 }
  0xf7   :  { %v366_v60 = vpop.f32.mrf.mxu0  ;;  %v435_v61 = vpop.f32.mrf.mxu1  ;;  %1411 = vmatpush.bf16.msra.mxu1 %v3431_v58 }
  0xf8   :  { %v380_v62 = vpack.c.bf16 %v366_v60, %v366_v60  ;;  %v449_v63 = vpack.c.bf16 %v435_v61, %v435_v61 }
  0xfa   :  { %v485_v4 = vunpack.c.l.b16 %v380_v62  ;;  %v711_v5 = vunpack.c.l.b16 %v449_v63 }
  0xff   :  { %v368_v0 = vpop.f32.mrf.mxu0  ;;  %v437_v1 = vpop.f32.mrf.mxu1 }
 0x100   :  { %v381_v2 = vpack.c.bf16 %v368_v0, %v368_v0  ;;  %v450_v3 = vpack.c.bf16 %v437_v1, %v437_v1 }
 0x102   :  { %v486_v6 = vunpack.c.l.b16 %v381_v2  ;;  %v712_v7 = vunpack.c.l.b16 %v450_v3 }
 0x104   :  { %v3438_v8 = vpack.c.b16 %v486_v6, %v485_v4  ;;  %v3440_v9 = vpack.c.b16 %v712_v7, %v711_v5 }
 0x106   :  { %563 = vmatmul.bf16.gmra.mxu2 %v3438_v8  ;;  %741 = vmatmul.bf16.gmra.mxu0 %v3440_v9 }
 0x107   :  { %v371_v10 = vpop.f32.mrf.mxu0  ;;  %v440_v11 = vpop.f32.mrf.mxu1 }
 0x108   :  { %v382_v12 = vpack.c.bf16 %v371_v10, %v371_v10  ;;  %v451_v13 = vpack.c.bf16 %v440_v11, %v440_v11 }
 0x10a   :  { %v487_v16 = vunpack.c.l.b16 %v382_v12  ;;  %v713_v17 = vunpack.c.l.b16 %v451_v13 }
 0x10f   :  { %v373_v14 = vpop.f32.mrf.mxu0  ;;  %v442_v15 = vpop.f32.mrf.mxu1 }
 0x110   :  { %v383_v18 = vpack.c.bf16 %v373_v14, %v373_v14  ;;  %v452_v19 = vpack.c.bf16 %v442_v15, %v442_v15 }
 0x112   :  { %v488_v20 = vunpack.c.l.b16 %v383_v18  ;;  %v714_v21 = vunpack.c.l.b16 %v452_v19 }
 0x114   :  { %v3444_v22 = vpack.c.b16 %v488_v20, %v487_v16  ;;  %v3446_v23 = vpack.c.b16 %v714_v21, %v713_v17 }
 0x116   :  { %568 = vmatmul.bf16.gmra.mxu2 %v3444_v22  ;;  %746 = vmatmul.bf16.gmra.mxu0 %v3446_v23 }
 0x163   :  { %v732_v24 = vpop.f32.mrf.mxu0 }
 0x164   :  { %v733_v27 = vadd.f32 %v2841_v25, %v732_v24 }
 0x166   :  { %v752_v30 = vmax.f32 %v733_v27, 0.0 }
 0x169   :  { %v554_v26 = vpop.f32.mrf.mxu2 }
 0x16a   :  { %v555_v32 = vadd.f32 %v2841_v25, %v554_v26  ;;  %v3456_v26 = vld [vmem:[%s3709_s6] ss:$0 sm:$0xff] }
 0x16b   :  { %v734_v28 = vpop.f32.mrf.mxu0 }
 0x16c   :  { %v735_v29 = vadd.f32 %v2841_v25, %v734_v28  ;;  %v574_v37 = vmax.f32 %v555_v32, 0.0 }
 0x16e   :  { %v753_v31 = vmax.f32 %v735_v29, 0.0 }
 0x170   :  { %v760_v33 = vpack.c.bf16 %v753_v31, %v752_v30 }
 0x171   :  { %v556_v34 = vpop.f32.mrf.mxu2 }
 0x172   :  { %v557_v35 = vadd.f32 %v2841_v25, %v556_v34  ;;  %772 = vmatmul.bf16.vlgmr.msrb.gmra.mxu1 %v760_v33 }
 0x173   :  { %v737_v36 = vpop.f32.mrf.mxu0 }
 0x174   :  { %v575_v38 = vmax.f32 %v557_v35, 0.0  ;;  %v738_v41 = vadd.f32 %v2841_v25, %v737_v36 }
 0x176   :  { %v582_v39 = vpack.c.bf16 %v575_v38, %v574_v37  ;;  %v754_v46 = vmax.f32 %v738_v41, 0.0 }
 0x178   :  { %662 = vmatmul.bf16.vlgmr.msra.gmra.mxu3 %v582_v39 }
 0x179   :  { %v559_v40 = vpop.f32.mrf.mxu2 }
 0x17a   :  { %v560_v48 = vadd.f32 %v2841_v25, %v559_v40 }
 0x17b   :  { %v739_v42 = vpop.f32.mrf.mxu0 }
 0x17c   :  { %v740_v43 = vadd.f32 %v2841_v25, %v739_v42  ;;  %v576_v53 = vmax.f32 %v560_v48, 0.0 }
 0x17e   :  { %v755_v47 = vmax.f32 %v740_v43, 0.0 }
 0x180   :  { %v761_v49 = vpack.c.bf16 %v755_v47, %v754_v46 }
 0x181   :  { %v561_v50 = vpop.f32.mrf.mxu2 }
 0x182   :  { %v562_v51 = vadd.f32 %v2841_v25, %v561_v50  ;;  %777 = vmatmul.bf16.gmra.mxu1 %v761_v49 }
 0x183   :  { %v742_v52 = vpop.f32.mrf.mxu0 }
 0x184   :  { %v577_v54 = vmax.f32 %v562_v51, 0.0  ;;  %v743_v57 = vadd.f32 %v2841_v25, %v742_v52 }
 0x186   :  { %v583_v55 = vpack.c.bf16 %v577_v54, %v576_v53  ;;  %v756_v62 = vmax.f32 %v743_v57, 0.0 }
 0x188   :  { %667 = vmatmul.bf16.gmra.mxu3 %v583_v55 }
 0x189   :  { %v564_v56 = vpop.f32.mrf.mxu2 }
 0x18a   :  { %v565_v0 = vadd.f32 %v2841_v25, %v564_v56 }
 0x18b   :  { %v744_v60 = vpop.f32.mrf.mxu0 }
 0x18c   :  { %v745_v61 = vadd.f32 %v2841_v25, %v744_v60  ;;  %v578_v5 = vmax.f32 %v565_v0, 0.0 }
 0x18e   :  { %v757_v63 = vmax.f32 %v745_v61, 0.0 }
 0x190   :  { %v762_v1 = vpack.c.bf16 %v757_v63, %v756_v62 }
 0x191   :  { %v566_v2 = vpop.f32.mrf.mxu2 }
 0x192   :  { %v567_v3 = vadd.f32 %v2841_v25, %v566_v2  ;;  %782 = vmatmul.bf16.gmra.mxu1 %v762_v1 }
 0x193   :  { %v747_v4 = vpop.f32.mrf.mxu0 }
 0x194   :  { %v579_v6 = vmax.f32 %v567_v3, 0.0  ;;  %v748_v10 = vadd.f32 %v2841_v25, %v747_v4 }
 0x196   :  { %v584_v7 = vpack.c.bf16 %v579_v6, %v578_v5  ;;  %v758_v13 = vmax.f32 %v748_v10, 0.0 }
 0x198   :  { %672 = vmatmul.bf16.gmra.mxu3 %v584_v7 }
 0x199   :  { %v569_v11 = vpop.f32.mrf.mxu2 }
 0x19a   :  { %v570_v15 = vadd.f32 %v2841_v25, %v569_v11 }
 0x19b   :  { %v749_v12 = vpop.f32.mrf.mxu0 }
 0x19c   :  { %v750_v14 = vadd.f32 %v2841_v25, %v749_v12  ;;  %v580_v19 = vmax.f32 %v570_v15, 0.0 }
 0x19e   :  { %v759_v16 = vmax.f32 %v750_v14, 0.0 }
 0x1a0   :  { %v763_v17 = vpack.c.bf16 %v759_v16, %v758_v13 }
 0x1a1   :  { %v571_v18 = vpop.f32.mrf.mxu2 }
 0x1a2   :  { %v572_v20 = vadd.f32 %v2841_v25, %v571_v18  ;;  %787 = vmatmul.bf16.gmra.mxu1 %v763_v17 }
 0x1a4   :  { %v581_v21 = vmax.f32 %v572_v20, 0.0 }
 0x1a6   :  { %v585_v24 = vpack.c.bf16 %v581_v21, %v580_v19 }
 0x1a8   :  { %677 = vmatmul.bf16.gmra.mxu3 %v585_v24 }
 0x1ef   :  { %v773_v27 = vpop.f32.mrf.mxu1 }
 0x1f0   :  { %v774_v28 = vadd.f32 %v3456_v26, %v773_v27 }
 0x1f2   :  { %v793_v29 = vmax.f32 %v774_v28, 0.0 }
 0x1f4   :  { %v801_v32 = vpack.c.bf16 %v793_v29, %v793_v29 }
 0x1f6   :  { %v817_v35 = vunpack.c.l.b16 %v801_v32 }
 0x1f7   :  { %v775_v30 = vpop.f32.mrf.mxu1 }
 0x1f8   :  { %v776_v31 = vadd.f32 %v3456_v26, %v775_v30 }
 0x1fa   :  { %v794_v33 = vmax.f32 %v776_v31, 0.0 }
 0x1fb   :  { %v663_v34 = vpop.f32.mrf.mxu3 }
 0x1fc   :  { %v802_v25 = vpack.c.bf16 %v794_v33, %v794_v33  ;;  %v664_v37 = vadd.f32 %v3456_v26, %v663_v34 }
 0x1fe   :  { %v818_v36 = vunpack.c.l.b16 %v802_v25  ;;  %v683_v40 = vmax.f32 %v664_v37, 0.0 }
 0x1ff   :  { %v778_v38 = vpop.f32.mrf.mxu1 }
 0x200   :  { %v819_v39 = vpack.c.b16 %v818_v36, %v817_v35  ;;  %v779_v41 = vadd.f32 %v3456_v26, %v778_v38  ;;  %v691_v46 = vpack.c.bf16 %v683_v40, %v683_v40 }
 0x202   :  { %828 = vmatpush.bf16.xpose.msrb.mxu2 %v819_v39  ;;  %v795_v47 = vmax.f32 %v779_v41, 0.0  ;;  %v811_v52 = vunpack.c.l.b16 %v691_v46 }
 0x203   :  { %v665_v42 = vpop.f32.mrf.mxu3 }
 0x204   :  { %v666_v43 = vadd.f32 %v3456_v26, %v665_v42  ;;  %v803_v53 = vpack.c.bf16 %v795_v47, %v795_v47 }
 0x206   :  { %v684_v48 = vmax.f32 %v666_v43, 0.0  ;;  %v843_v61 = vunpack.c.l.b16 %v803_v53 }
 0x207   :  { %v780_v49 = vpop.f32.mrf.mxu1 }
 0x208   :  { %v692_v50 = vpack.c.bf16 %v684_v48, %v684_v48  ;;  %v781_v51 = vadd.f32 %v3456_v26, %v780_v49 }
 0x20a   :  { %v812_v54 = vunpack.c.l.b16 %v692_v50  ;;  %v796_v55 = vmax.f32 %v781_v51, 0.0 }
 0x20b   :  { %v668_v56 = vpop.f32.mrf.mxu3 }
 0x20c   :  { %v804_v57 = vpack.c.bf16 %v796_v55, %v796_v55  ;;  %v813_v60 = vpack.c.b16 %v812_v54, %v811_v52  ;;  %v669_v63 = vadd.f32 %v3456_v26, %v668_v56 }
 0x20e   :  { %v844_v62 = vunpack.c.l.b16 %v804_v57  ;;  %829 = vmatmul.bf16.vlgmr.msrb.gmra.mxu2 %v813_v60  ;;  %v685_v2 = vmax.f32 %v669_v63, 0.0  ;;  %v913_v63 = vlaneseq }
 0x20f   :  { %v783_v0 = vpop.f32.mrf.mxu1 }
 0x210   :  { %v845_v1 = vpack.c.b16 %v844_v62, %v843_v61  ;;  %v784_v3 = vadd.f32 %v3456_v26, %v783_v0  ;;  %v693_v6 = vpack.c.bf16 %v685_v2, %v685_v2  ;;  %v914_v0 = vand.u32 127, %v913_v63 }
 0x212   :  { %854 = vmatpush.bf16.xpose.msrb.mxu3 %v845_v1  ;;  %v797_v7 = vmax.f32 %v784_v3, 0.0  ;;  %v837_v14 = vunpack.c.l.b16 %v693_v6  ;;  %vm915_vm0 = vcmp.lt.s32.totalorder %v914_v0, 12 }
 0x213   :  { %v670_v4 = vpop.f32.mrf.mxu3 }
 0x214   :  { %v671_v5 = vadd.f32 %v3456_v26, %v670_v4  ;;  %v805_v15 = vpack.c.bf16 %v797_v7, %v797_v7 }
 0x216   :  { %v686_v10 = vmax.f32 %v671_v5, 0.0  ;;  %v869_v21 = vunpack.c.l.b16 %v805_v15 }
 0x217   :  { %v785_v11 = vpop.f32.mrf.mxu1 }
 0x218   :  { %v694_v12 = vpack.c.bf16 %v686_v10, %v686_v10  ;;  %v786_v13 = vadd.f32 %v3456_v26, %v785_v11 }
 0x21a   :  { %v838_v16 = vunpack.c.l.b16 %v694_v12  ;;  %v798_v17 = vmax.f32 %v786_v13, 0.0 }
 0x21b   :  { %v673_v18 = vpop.f32.mrf.mxu3 }
 0x21c   :  { %v806_v19 = vpack.c.bf16 %v798_v17, %v798_v17  ;;  %v839_v20 = vpack.c.b16 %v838_v16, %v837_v14  ;;  %v674_v27 = vadd.f32 %v3456_v26, %v673_v18 }
 0x21e   :  { %v870_v24 = vunpack.c.l.b16 %v806_v19  ;;  %855 = vmatmul.bf16.vlgmr.msrb.gmra.mxu3 %v839_v20  ;;  %v687_v31 = vmax.f32 %v674_v27, 0.0 }
 0x21f   :  { %v788_v28 = vpop.f32.mrf.mxu1 }
 0x220   :  { %v871_v29 = vpack.c.b16 %v870_v24, %v869_v21  ;;  %v789_v30 = vadd.f32 %v3456_v26, %v788_v28  ;;  %v695_v25 = vpack.c.bf16 %v687_v31, %v687_v31 }
 0x222   :  { %880 = vmatpush.bf16.xpose.msra.mxu2 %v871_v29  ;;  %v799_v33 = vmax.f32 %v789_v30, 0.0  ;;  %v863_v40 = vunpack.c.l.b16 %v695_v25 }
 0x223   :  { %v675_v32 = vpop.f32.mrf.mxu3 }
 0x224   :  { %v676_v34 = vadd.f32 %v3456_v26, %v675_v32  ;;  %v807_v37 = vpack.c.bf16 %v799_v33, %v799_v33 }
 0x226   :  { %v688_v35 = vmax.f32 %v676_v34, 0.0  ;;  %v895_v46 = vunpack.c.l.b16 %v807_v37 }
 0x227   :  { %v790_v36 = vpop.f32.mrf.mxu1 }
 0x228   :  { %v696_v38 = vpack.c.bf16 %v688_v35, %v688_v35  ;;  %v791_v39 = vadd.f32 %v3456_v26, %v790_v36 }
 0x22a   :  { %1293 = vmatpush.bf16.msrb.mxu2 %v3426_v45  ;;  %v864_v41 = vunpack.c.l.b16 %v696_v38  ;;  %v800_v42 = vmax.f32 %v791_v39, 0.0  ;;  %v3250_v38 = vmov -inf  }
 0x22b   :  { %v678_v43 = vpop.f32.mrf.mxu3  ;;  %v1035_v39 = vsel %vm933_vm1, -1e+30, %v3250_v38 }
 0x22c   :  { %v865_v47 = vpack.c.b16 %v864_v41, %v863_v40  ;;  %v808_v48 = vpack.c.bf16 %v800_v42, %v800_v42  ;;  %v679_v49 = vadd.f32 %v3456_v26, %v678_v43 }
 0x22e   :  { %v896_v50 = vunpack.c.l.b16 %v808_v48  ;;  %881 = vmatmul.bf16.vlgmr.msra.gmra.mxu2 %v865_v47  ;;  %v689_v52 = vmax.f32 %v679_v49, 0.0 }
 0x22f   :  { %1337 = vmatpush.bf16.msra.mxu2 %v3440_v9 }
 0x230   :  { %v897_v51 = vpack.c.b16 %v896_v50, %v895_v46  ;;  %v697_v54 = vpack.c.bf16 %v689_v52, %v689_v52 }
 0x232   :  { %906 = vmatpush.bf16.xpose.msra.mxu3 %v897_v51  ;;  %v889_v57 = vunpack.c.l.b16 %v697_v54 }
 0x233   :  { %v680_v53 = vpop.f32.mrf.mxu3 }
 0x234   :  { %v681_v55 = vadd.f32 %v3456_v26, %v680_v53 }
 0x236   :  { %v690_v56 = vmax.f32 %v681_v55, 0.0 }
 0x238   :  { %v698_v60 = vpack.c.bf16 %v690_v56, %v690_v56 }
 0x23a   :  { %1315 = vmatpush.bf16.msrb.mxu3 %v3433_v59  ;;  %v890_v61 = vunpack.c.l.b16 %v698_v60 }
 0x23c   :  { %v891_v62 = vpack.c.b16 %v890_v61, %v889_v57 }
 0x23e   :  { %907 = vmatmul.bf16.vlgmr.msra.gmra.mxu3 %v891_v62 }
 0x23f   :  { %1359 = vmatpush.bf16.msra.mxu3 %v3446_v23 }
 0x291   :  { %v3479_v1 = vpop.f32.mrf.mxu2 }
 0x292   :  { %v925_v2 = vsel %vm915_vm0, %v3479_v1, -1e+30  ;;  %v1034_v43 = vsel %vm933_vm1, %v3479_v1, -inf }
 0x293   :  { %v934_v26 = vsel %vm933_vm1, %v925_v2, -inf  ;;  %v1036_v51 = vmax.f32 %v1034_v43, %v1035_v39 }
 0x294   :  { %935 = vmax.xlane.f32.xlu0 %v934_v26 }
 0x295   :  { %v1037_v55 = vrot.slane %v1036_v51, 4 }
 0x297   :  { %v1038_v26 = vmax.f32 %v1036_v51, %v1037_v55 }
 0x299   :  { %v832_v3 = vpop.f32.mrf.mxu2 }
 0x29a   :  { %v926_v4 = vsel %vm915_vm0, %v832_v3, -1e+30 }
 0x29b   :  { %v937_v5 = vsel %vm933_vm1, %v926_v4, -inf }
 0x29c   :  { %938 = vmax.xlane.f32.xlu0 %v937_v5 }
 0x2a1   :  { %v3486_v6 = vpop.f32.mrf.mxu3 }
 0x2a2   :  { %v927_v7 = vsel %vm915_vm0, %v3486_v6, -1e+30  ;;  %v1043_v35 = vsel %vm933_vm1, %v3486_v6, -inf }
 0x2a3   :  { %v940_v10 = vsel %vm933_vm1, %v927_v7, -inf  ;;  %v1045_v40 = vmax.f32 %v1043_v35, %v1035_v39 }
 0x2a4   :  { %941 = vmax.xlane.f32.xlu1 %v940_v10  ;;  %v1039_v10 = vrot.slane %v1038_v26, 2 }
 0x2a5   :  { %v1046_v46 = vrot.slane %v1045_v40, 4 }
 0x2a7   :  { %v1047_v52 = vmax.f32 %v1045_v40, %v1046_v46 }
 0x2a9   :  { %v858_v11 = vpop.f32.mrf.mxu3  ;;  %v1048_v57 = vrot.slane %v1047_v52, 2 }
 0x2aa   :  { %v928_v12 = vsel %vm915_vm0, %v858_v11, -1e+30 }
 0x2ab   :  { %v943_v13 = vsel %vm933_vm1, %v928_v12, -inf  ;;  %v1049_v3 = vmax.f32 %v1047_v52, %v1048_v57 }
 0x2ac   :  { %944 = vmax.xlane.f32.xlu1 %v943_v13 }
 0x2b1   :  { %v3493_v14 = vpop.f32.mrf.mxu2 }
 0x2b2   :  { %v3497_v15 = vsel %vm915_vm0, %v3493_v14, -1e+30  ;;  %v1052_v48 = vsel %vm933_vm1, %v3493_v14, -inf }
 0x2b3   :  { %v946_v16 = vsel %vm933_vm1, %v3497_v15, -inf  ;;  %v1054_v53 = vmax.f32 %v1052_v48, %v1035_v39 }
 0x2b4   :  { %947 = vmax.xlane.f32.xlu2 %v946_v16 }
 0x2b5   :  { %v1055_v60 = vrot.slane %v1054_v53, 4 }
 0x2b9   :  { %v884_v17 = vpop.f32.mrf.mxu2 }
 0x2ba   :  { %v3502_v18 = vsel %vm915_vm0, %v884_v17, -1e+30 }
 0x2bb   :  { %v949_v19 = vsel %vm933_vm1, %v3502_v18, -inf }
 0x2bc   :  { %950 = vmax.xlane.f32.xlu2 %v949_v19 }
 0x2c1   :  { %v3506_v20 = vpop.f32.mrf.mxu3 }
 0x2c2   :  { %v3510_v21 = vsel %vm915_vm0, %v3506_v20, -1e+30  ;;  %v1061_v62 = vsel %vm933_vm1, %v3506_v20, -inf }
 0x2c3   :  { %v952_v24 = vsel %vm933_vm1, %v3510_v21, -inf  ;;  %v1063_v5 = vmax.f32 %v1061_v62, %v1035_v39 }
 0x2c4   :  { %953 = vmax.xlane.f32.xlu0 %v952_v24 }
 0x2c5   :  { %v1064_v16 = vrot.slane %v1063_v5, 4 }
 0x2c9   :  { %v910_v27 = vpop.f32.mrf.mxu3 }
 0x2ca   :  { %v3515_v28 = vsel %vm915_vm0, %v910_v27, -1e+30  ;;  %v1040_v27 = vmax.f32 %v1038_v26, %v1039_v10 }
 0x2cb   :  { %v955_v29 = vsel %vm933_vm1, %v3515_v28, -inf }
 0x2cc   :  { %956 = vmax.xlane.f32.xlu1 %v955_v29 }
 0x307   :  { %v936_v30 = vpop.xlane.xlu0 %935 }
 0x308   :  { %v958_v31 = vsub.f32 %v925_v2, %v936_v30 }
 0x30a   :  { %v966_v32 = vmul.f32 1.442695, %v958_v31  ;;  %v1065_v31 = vmax.f32 %v1063_v5, %v1064_v16 }
 0x30c   :  { %2848 = vpow2.f32 %v966_v32 }
 0x30f   :  { %v939_v33 = vpop.xlane.xlu0 %938 }
 0x310   :  { %v959_v34 = vsub.f32 %v926_v4, %v939_v33  ;;  %v1056_v4 = vmax.f32 %v1054_v53, %v1055_v60  ;;  %v1041_v33 = vrot.slane %v1040_v27, 1 }
 0x312   :  { %v3519_v25 = vpop.eup %2848  ;;  %v968_v36 = vmul.f32 1.442695, %v959_v34  ;;  %v1057_v13 = vrot.slane %v1056_v4, 2 }
 0x313   :  { %v982_v37 = vsel %vm933_vm1, %v3519_v25, 0.0 }
 0x314   :  { %2850 = vpow2.f32 %v968_v36  ;;  %983 = vadd.xlane.f32.xlu2 %v982_v37  ;;  %v1058_v30 = vmax.f32 %v1056_v4, %v1057_v13  ;;  %v1066_v36 = vrot.slane %v1065_v31, 2 }
 0x316   :  { %v1059_v35 = vrot.slane %v1058_v30, 1  ;;  %v1067_v46 = vmax.f32 %v1065_v31, %v1066_v36 }
 0x317   :  { %v942_v41 = vpop.xlane.xlu1 %941 }
 0x318   :  { %v960_v42 = vsub.f32 %v927_v7, %v942_v41  ;;  %v1042_v41 = vmax.f32 %v1040_v27, %v1041_v33  ;;  %v1060_v43 = vmax.f32 %v1058_v30, %v1059_v35  ;;  %v1068_v51 = vrot.slane %v1067_v46, 1 }
 0x31a   :  { %v3528_v47 = vpop.eup %2850  ;;  %v970_v49 = vmul.f32 1.442695, %v960_v42  ;;  %v1075_v53 = vsub.f32 -1e+30, %v1060_v43  ;;  %v1071_v55 = vsub.f32 -1e+30, %v1042_v41 }
 0x31b   :  { %v985_v50 = vsel %vm933_vm1, %v3528_v47, 0.0 }
 0x31c   :  { %2852 = vpow2.f32 %v970_v49  ;;  %986 = vadd.xlane.f32.xlu0 %v985_v50  ;;  %v1074_v50 = vsub.f32 %v3493_v14, %v1060_v43  ;;  %v1088_v62 = vmul.f32 1.442695, %v1075_v53 }
 0x31e   :  { %v1086_v60 = vmul.f32 1.442695, %v1074_v50 }
 0x31f   :  { %v945_v54 = vpop.xlane.xlu1 %944 }
 0x320   :  { %v961_v56 = vsub.f32 %v928_v12, %v945_v54  ;;  %v1050_v12 = vrot.slane %v1049_v3, 1 }
 0x322   :  { %v3534_v61 = vpop.eup %2852  ;;  %v972_v0 = vmul.f32 1.442695, %v961_v56  ;;  %v1051_v29 = vmax.f32 %v1049_v3, %v1050_v12 }
 0x323   :  { %v988_v2 = vsel %vm933_vm1, %v3534_v61, 0.0 }
 0x324   :  { %2854 = vpow2.f32 %v972_v0  ;;  %989 = vadd.xlane.f32.xlu1 %v988_v2  ;;  %v1073_v38 = vsub.f32 -1e+30, %v1051_v29  ;;  %v1080_v0 = vmul.f32 1.442695, %v1071_v55 }
 0x326   :  { %v1084_v48 = vmul.f32 1.442695, %v1073_v38 }
 0x327   :  { %v948_v7 = vpop.xlane.xlu2 %947 }
 0x328   :  { %v962_v11 = vsub.f32 %v3497_v15, %v948_v7  ;;  %v1072_v15 = vsub.f32 %v3486_v6, %v1051_v29 }
 0x32a   :  { %v3541_v17 = vpop.eup %2854  ;;  %v974_v19 = vmul.f32 1.442695, %v962_v11  ;;  %v1082_v42 = vmul.f32 1.442695, %v1072_v15 }
 0x32b   :  { %v991_v24 = vsel %vm933_vm1, %v3541_v17, 0.0 }
 0x32c   :  { %2856 = vpow2.f32 %v974_v19  ;;  %992 = vadd.xlane.f32.xlu2 %v991_v24 }
 0x32f   :  { %v951_v32 = vpop.xlane.xlu2 %950 }
 0x330   :  { %v963_v34 = vsub.f32 %v3502_v18, %v951_v32  ;;  %v1070_v18 = vsub.f32 %v3479_v1, %v1042_v41  ;;  %v1069_v1 = vmax.f32 %v1067_v46, %v1068_v51 }
 0x332   :  { %v3547_v37 = vpop.eup %2856  ;;  %v976_v39 = vmul.f32 1.442695, %v963_v34  ;;  %v1078_v57 = vmul.f32 1.442695, %v1070_v18  ;;  %v1076_v3 = vsub.f32 %v3506_v20, %v1069_v1  ;;  %v1077_v5 = vsub.f32 -1e+30, %v1069_v1 }
 0x333   :  { %v994_v40 = vsel %vm933_vm1, %v3547_v37, 0.0 }
 0x334   :  { %2858 = vpow2.f32 %v976_v39  ;;  %995 = vadd.xlane.f32.xlu0 %v994_v40  ;;  %v1092_v16 = vmul.f32 1.442695, %v1077_v5 }
 0x335   :  { %2860 = vpow2.f32 %v1082_v42 }
 0x336   :  { %2862 = vpow2.f32 %v1084_v48 }
 0x337   :  { %v954_v49 = vpop.xlane.xlu0 %953 }
 0x338   :  { %v964_v6 = vsub.f32 %v3510_v21, %v954_v49 }
 0x33a   :  { %v3554_v52 = vpop.eup %2858  ;;  %v978_v54 = vmul.f32 1.442695, %v964_v6 }
 0x33b   :  { %v997_v56 = vsel %vm933_vm1, %v3554_v52, 0.0  ;;  %v3558_v21 = vpop.eup %2860 }
 0x33c   :  { %2864 = vpow2.f32 %v978_v54  ;;  %998 = vadd.xlane.f32.xlu1 %v997_v56  ;;  %v3560_v2 = vpop.eup %2862  ;;  %v1103_v10 = vsel %vm933_vm1, %v3558_v21, 0.0 }
 0x33d   :  { %2866 = vpow2.f32 %v1078_v57  ;;  %v1104_v11 = vsel %vm933_vm1, %v3560_v2, 0.0 }
 0x33e   :  { %2868 = vpow2.f32 %v1086_v60  ;;  %v1105_v20 = vadd.f32 %v1104_v11, %v1103_v10 }
 0x33f   :  { %v957_v14 = vpop.xlane.xlu1 %956  ;;  %2870 = vpow2.f32 %v1088_v62 }
 0x340   :  { %v965_v26 = vsub.f32 %v3515_v28, %v957_v14  ;;  %2872 = vpow2.f32 %v1080_v0  ;;  %v1090_v28 = vmul.f32 1.442695, %v1076_v3  ;;  %v1106_v30 = vrot.slane %v1105_v20, 4 }
 0x342   :  { %v3564_v4 = vpop.eup %2864  ;;  %v980_v7 = vmul.f32 1.442695, %v965_v26  ;;  %v1107_v36 = vadd.f32 %v1106_v30, %v1105_v20 }
 0x343   :  { %v1000_v12 = vsel %vm933_vm1, %v3564_v4, 0.0  ;;  %v2867_v13 = vpop.eup %2866 }
 0x344   :  { %2874 = vpow2.f32 %v980_v7  ;;  %1001 = vadd.xlane.f32.xlu2 %v1000_v12  ;;  %v2869_v19 = vpop.eup %2868  ;;  %v1094_v34 = vsel %vm933_vm1, %v2867_v13, 0.0  ;;  %v1108_v42 = vrot.slane %v1107_v36, 2 }
 0x345   :  { %v2871_v24 = vpop.eup %2870  ;;  %2876 = vpow2.f32 %v1090_v28  ;;  %v1112_v31 = vsel %vm933_vm1, %v2869_v19, 0.0 }
 0x346   :  { %v2873_v27 = vpop.eup %2872  ;;  %2878 = vpow2.f32 %v1092_v16  ;;  %v1113_v32 = vsel %vm933_vm1, %v2871_v24, 0.0  ;;  %v1109_v18 = vadd.f32 %v1108_v42, %v1107_v36 }
 0x347   :  { %v1095_v15 = vsel %vm933_vm1, %v2873_v27, 0.0  ;;  %v1114_v35 = vadd.f32 %v1113_v32, %v1112_v31 }
 0x348   :  { %v1096_v39 = vadd.f32 %v1095_v15, %v1094_v34  ;;  %v1110_v53 = vrot.slane %v1109_v18, 1 }
 0x349   :  { %v1115_v41 = vrot.slane %v1114_v35, 4 }
 0x34a   :  { %v3572_v29 = vpop.eup %2874  ;;  %v1097_v43 = vrot.slane %v1096_v39, 4  ;;  %v1111_v56 = vadd.f32 %v1110_v53, %v1109_v18 }
 0x34b   :  { %v1003_v33 = vsel %vm933_vm1, %v3572_v29, 0.0  ;;  %v2877_v38 = vpop.eup %2876  ;;  %v1116_v6 = vadd.f32 %v1115_v41, %v1114_v35 }
 0x34c   :  { %1004 = vadd.xlane.f32.xlu0 %v1003_v33  ;;  %v2879_v40 = vpop.eup %2878  ;;  %v1121_v46 = vsel %vm933_vm1, %v2877_v38, 0.0  ;;  %v1098_v50 = vadd.f32 %v1097_v43, %v1096_v39  ;;  %2880 = vrcp.f32 %v1111_v56 }
 0x34d   :  { %v1122_v48 = vsel %vm933_vm1, %v2879_v40, 0.0  ;;  %v1117_v54 = vrot.slane %v1116_v6, 2 }
 0x34e   :  { %v1123_v49 = vadd.f32 %v1122_v48, %v1121_v46  ;;  %v1099_v55 = vrot.slane %v1098_v50, 2 }
 0x34f   :  { %v1118_v57 = vadd.f32 %v1117_v54, %v1116_v6 }
 0x350   :  { %v1124_v51 = vrot.slane %v1123_v49, 4  ;;  %v1100_v1 = vadd.f32 %v1099_v55, %v1098_v50  ;;  %v3591_v55 = vld [vmem:[#allocation11 + $0x38] sm:$0xff] }
 0x351   :  { %v1119_v62 = vrot.slane %v1118_v57, 1  ;;  %1627 = vmatpush.bf16.msrb.mxu1 %v3591_v55 }
 0x352   :  { %v1125_v60 = vadd.f32 %v1124_v51, %v1123_v49  ;;  %v1101_v14 = vrot.slane %v1100_v1, 1  ;;  %v2881_v7 = vpop.eup %2880 }
 0x353   :  { %v1120_v26 = vadd.f32 %v1119_v62, %v1118_v57  ;;  %v1136_v11 = vmul.f32 %v2881_v7, %v3558_v21  ;;  %v1137_v16 = vmul.f32 %v2881_v7, %v3560_v2 }
 0x354   :  { %v1126_v0 = vrot.slane %v1125_v60, 2  ;;  %v1102_v5 = vadd.f32 %v1101_v14, %v1100_v1 }
 0x355   :  { %2882 = vrcp.f32 %v1120_v26 }
 0x356   :  { %v1127_v3 = vadd.f32 %v1126_v0, %v1125_v60  ;;  %2884 = vrcp.f32 %v1102_v5 }
 0x358   :  { %v1128_v10 = vrot.slane %v1127_v3, 1 }
 0x35a   :  { %v1129_v12 = vadd.f32 %v1128_v10, %v1127_v3 }
 0x35b   :  { %v2883_v28 = vpop.eup %2882 }
 0x35c   :  { %v2885_v20 = vpop.eup %2884  ;;  %2886 = vrcp.f32 %v1129_v12  ;;  %v1138_v30 = vmul.f32 %v2883_v28, %v2869_v19  ;;  %v1139_v34 = vmul.f32 %v2883_v28, %v2871_v24 }
 0x35d   :  { %v1134_v31 = vmul.f32 %v2885_v20, %v2867_v13  ;;  %v1135_v15 = vmul.f32 %v2885_v20, %v2873_v27 }
 0x362   :  { %v2887_v32 = vpop.eup %2886 }
 0x363   :  { %v1140_v33 = vmul.f32 %v2887_v32, %v2877_v38  ;;  %v1141_v21 = vmul.f32 %v2887_v32, %v2879_v40  ;;  %v3613_v32 = vld [vmem:[#allocation11 + $0x10] sm:$0xff] }
 0x36d   :  { %1174 = vxpose.xlu2.b32.start [1/2] (short) (narrow) %v1136_v11, 16 }
 0x375   :  { %1175 = vxpose.xlu2.b32.end [2/2] (short) (narrow) %v1137_v16, 16  ;;  %1206 = vxpose.xlu0.b32.start [1/2] (short) (narrow) %v1138_v30, 16  ;;  %v3601_v16 = vld [vmem:[#allocation11 + $0x30] sm:$0xff]  ;;  %v3604_v30 = vld [vmem:[#allocation11 + $0x28] sm:$0xff] }
 0x376   :  { %1142 = vxpose.xlu1.b32.start [1/2] (short) (narrow) %v1134_v31, 16  ;;  %1628 = vmatpush.bf16.msrb.mxu1 %v3601_v16  ;;  %v3607_v31 = vld [vmem:[#allocation11 + $0x20] sm:$0xff] }
 0x37a   :  { %1629 = vmatpush.bf16.msrb.mxu1 %v3604_v30 }
 0x37d   :  { %1238 = vxpose.xlu2.b32.start [1/2] (short) (narrow) %v1140_v33, 16  ;;  %1207 = vxpose.xlu0.b32.end [2/2] (short) (narrow) %v1139_v34, 16  ;;  %v2782_v33 = vld [vmem:[#allocation13 + $0x30] sm:$0xff]  ;;  %v3616_v34 = vld [vmem:[#allocation11 + $0x8] sm:$0xff] }
 0x37e   :  { %1143 = vxpose.xlu1.b32.end [2/2] (short) (narrow) %v1135_v15, 16  ;;  %1630 = vmatpush.bf16.msrb.mxu1 %v3607_v31  ;;  %v2781_v15 = vld [vmem:[#allocation13 + $0x28] sm:$0xff] }
 0x385   :  { %1239 = vxpose.xlu2.b32.end [2/2] (short) (narrow) %v1141_v21, 16  ;;  %v3619_v21 = vld [vmem:[#allocation11] sm:$0xff] }
 0x387   :  { %v984_v35 = vpop.xlane.xlu2 %983 }
 0x388   :  { %2888 = vrcp.f32 %v984_v35 }
 0x38e   :  { %v2889_v39 = vpop.eup %2888 }
 0x38f   :  { %v987_v36 = vpop.xlane.xlu0 %986  ;;  %v1014_v2 = vmul.f32 %v2889_v39, %v3519_v25  ;;  %v2779_v39 = vld [vmem:[#allocation13 + $0x18] sm:$0xff] }
 0x390   :  { %2890 = vrcp.f32 %v987_v36  ;;  %v2780_v36 = vld [vmem:[#allocation13 + $0x20] sm:$0xff] }
 0x391   :  { %v1270_v19 = vpack.c.bf16 %v1014_v2, %v1014_v2 }
 0x393   :  { %v1280_v24 = vunpack.c.l.b16 %v1270_v19 }
 0x396   :  { %v2891_v13 = vpop.eup %2890 }
 0x397   :  { %v1015_v41 = vmul.f32 %v2891_v13, %v3528_v47  ;;  %v990_v42 = vpop.xlane.xlu1 %989  ;;  %v2778_v13 = vld [vmem:[#allocation13 + $0x10] sm:$0xff] }
 0x398   :  { %2892 = vrcp.f32 %v990_v42 }
 0x399   :  { %v1271_v38 = vpack.c.bf16 %v1015_v41, %v1015_v41 }
 0x39b   :  { %v1281_v27 = vunpack.c.l.b16 %v1271_v38 }
 0x39d   :  { %v1282_v43 = vpack.c.b16 %v1281_v27, %v1280_v24  ;;  %v2777_v24 = vld [vmem:[#allocation13 + $0x8] sm:$0xff] }
 0x39e   :  { %v2893_v40 = vpop.eup %2892 }
 0x39f   :  { %v993_v46 = vpop.xlane.xlu2 %992  ;;  %2504 = vmatmul.msk.bf16.vlgmr.msrb.gmra.mxu2 %vm933_vm1, %v1282_v43  ;;  %v1016_v48 = vmul.f32 %v2893_v40, %v3534_v61  ;;  %v2776_v43 = vld [vmem:[#allocation13] sm:$0xff] }
 0x3a0   :  { %2894 = vrcp.f32 %v993_v46  ;;  %1433 = vmatpush.bf16.msrb.mxu2 %v3438_v8 }
 0x3a1   :  { %v1272_v49 = vpack.c.bf16 %v1016_v48, %v1016_v48 }
 0x3a3   :  { %v1302_v50 = vunpack.c.l.b16 %v1272_v49 }
 0x3a6   :  { %v2895_v25 = vpop.eup %2894 }
 0x3a7   :  { %v1017_v18 = vmul.f32 %v2895_v25, %v3541_v17  ;;  %v996_v47 = vpop.xlane.xlu0 %995 }
 0x3a8   :  { %2896 = vrcp.f32 %v996_v47 }
 0x3a9   :  { %v1273_v6 = vpack.c.bf16 %v1017_v18, %v1017_v18 }
 0x3ab   :  { %v1303_v51 = vunpack.c.l.b16 %v1273_v6 }
 0x3ad   :  { %v1304_v53 = vpack.c.b16 %v1303_v51, %v1302_v50 }
 0x3ae   :  { %v2897_v56 = vpop.eup %2896 }
 0x3af   :  { %2505 = vmatmul.msk.bf16.vlgmr.msrb.gmra.mxu3 %vm933_vm1, %v1304_v53  ;;  %v999_v54 = vpop.xlane.xlu1 %998  ;;  %v1018_v61 = vmul.f32 %v2897_v56, %v3547_v37 }
 0x3b0   :  { %1455 = vmatpush.bf16.msrb.mxu3 %v3444_v22  ;;  %2898 = vrcp.f32 %v999_v54 }
 0x3b1   :  { %v1274_v57 = vpack.c.bf16 %v1018_v61, %v1018_v61 }
 0x3b3   :  { %v1324_v0 = vunpack.c.l.b16 %v1274_v57 }
 0x3b6   :  { %v2899_v17 = vpop.eup %2898 }
 0x3b7   :  { %v1019_v60 = vmul.f32 %v2899_v17, %v3554_v52  ;;  %v1002_v1 = vpop.xlane.xlu2 %1001 }
 0x3b8   :  { %2900 = vrcp.f32 %v1002_v1 }
 0x3b9   :  { %v1275_v62 = vpack.c.bf16 %v1019_v60, %v1019_v60 }
 0x3bb   :  { %v1325_v14 = vunpack.c.l.b16 %v1275_v62 }
 0x3bd   :  { %v1326_v26 = vpack.c.b16 %v1325_v14, %v1324_v0 }
 0x3be   :  { %v2901_v5 = vpop.eup %2900 }
 0x3bf   :  { %v1005_v3 = vpop.xlane.xlu0 %1004  ;;  %2506 = vmatmul.msk.bf16.vlgmr.msra.gmra.mxu2 %vm933_vm1, %v1326_v26  ;;  %v1020_v7 = vmul.f32 %v2901_v5, %v3564_v4  ;;  %v3610_v4 = vld [vmem:[#allocation11 + $0x18] sm:$0xff] }
 0x3c0   :  { %2902 = vrcp.f32 %v1005_v3  ;;  %1631 = vmatpush.bf16.msrb.mxu1 %v3610_v4 }
 0x3c1   :  { %v1276_v11 = vpack.c.bf16 %v1020_v7, %v1020_v7 }
 0x3c3   :  { %v1346_v28 = vunpack.c.l.b16 %v1276_v11 }
 0x3c4   :  { %1632 = vmatpush.bf16.msrb.mxu1 %v3613_v32 }
 0x3c6   :  { %v2903_v10 = vpop.eup %2902 }
 0x3c7   :  { %v1021_v37 = vmul.f32 %v2903_v10, %v3572_v29  ;;  %v2783_v29 = vld [vmem:[#allocation13 + $0x38] sm:$0xff] }
 0x3c8   :  { %1550 = vmatpush.bf16.msrb.mxu0 %v2783_v29  ;;  %1633 = vmatpush.bf16.msrb.mxu1 %v3616_v34 }
 0x3c9   :  { %v1277_v12 = vpack.c.bf16 %v1021_v37, %v1021_v37 }
 0x3cb   :  { %v1347_v52 = vunpack.c.l.b16 %v1277_v12 }
 0x3cc   :  { %1551 = vmatpush.bf16.msrb.mxu0 %v2782_v33  ;;  %1634 = vmatpush.bf16.msrb.mxu1 %v3619_v21 }
 0x3cd   :  { %v1348_v20 = vpack.c.b16 %v1347_v52, %v1346_v28  ;;  %v2791_v52 = vld [vmem:[#allocation14 + $0x38] sm:$0xff] }
 0x3ce   :  { %1748 = vmatpush.bf16.msra.mxu2 %v2791_v52 }
 0x3cf   :  { %2507 = vmatmul.msk.bf16.vlgmr.msra.gmra.mxu3 %vm933_vm1, %v1348_v20  ;;  %v2789_v20 = vld [vmem:[#allocation14 + $0x28] sm:$0xff] }
 0x3d0   :  { %1785 = vmatpush.bf16.msra.mxu3 %v2783_v29  ;;  %1552 = vmatpush.bf16.msrb.mxu0 %v2781_v15 }
 0x3d4   :  { %1786 = vmatpush.bf16.msra.mxu3 %v2782_v33  ;;  %1553 = vmatpush.bf16.msrb.mxu0 %v2780_v36 }
 0x3d8   :  { %1787 = vmatpush.bf16.msra.mxu3 %v2781_v15  ;;  %1554 = vmatpush.bf16.msrb.mxu0 %v2779_v39 }
 0x3dc   :  { %1788 = vmatpush.bf16.msra.mxu3 %v2780_v36  ;;  %1555 = vmatpush.bf16.msrb.mxu0 %v2778_v13 }
 0x3e0   :  { %1789 = vmatpush.bf16.msra.mxu3 %v2779_v39  ;;  %1556 = vmatpush.bf16.msrb.mxu0 %v2777_v24 }
 0x3e4   :  { %1790 = vmatpush.bf16.msra.mxu3 %v2778_v13  ;;  %1557 = vmatpush.bf16.msrb.mxu0 %v2776_v43 }
 0x3e8   :  { %1791 = vmatpush.bf16.msra.mxu3 %v2777_v24 }
 0x3ec   :  { %1792 = vmatpush.bf16.msra.mxu3 %v2776_v43 }
 0x406   :  { %v1190_v35 = vpop.trf.xlu2 }
 0x407   :  { %v1368_v2 = vpack.c.bf16 %v1190_v35, %v1190_v35  ;;  %v3645_v35 = vld [vmem:[%s3712_s9] ss:$0 sm:$0xff] }
 0x409   :  { %v1398_v41 = vunpack.c.l.b16 %v1368_v2 }
 0x40e   :  { %v1191_v19 = vpop.trf.xlu2 }
 0x40f   :  { %v1369_v42 = vpack.c.bf16 %v1191_v19, %v1191_v19 }
 0x411   :  { %v1399_v38 = vunpack.c.l.b16 %v1369_v42 }
 0x413   :  { %v1400_v27 = vpack.c.b16 %v1399_v38, %v1398_v41 }
 0x415   :  { %2509 = vmatmul.msk.bf16.vlgmr.msra.gmra.mxu1 %vm933_vm1, %v1400_v27 }
 0x416   :  { %v1254_v46 = vpop.trf.xlu2  ;;  %1863 = vmatpush.bf16.msra.mxu1 %v2791_v52 }
 0x417   :  { %v1372_v18 = vpack.c.bf16 %v1254_v46, %v1254_v46 }
 0x419   :  { %v1222_v40 = vpop.trf.xlu0  ;;  %v1442_v51 = vunpack.c.l.b16 %v1372_v18 }
 0x41a   :  { %v1158_v48 = vpop.trf.xlu1  ;;  %v1370_v25 = vpack.c.bf16 %v1222_v40, %v1222_v40 }
 0x41b   :  { %v1366_v6 = vpack.c.bf16 %v1158_v48, %v1158_v48 }
 0x41c   :  { %v1420_v56 = vunpack.c.l.b16 %v1370_v25 }
 0x41d   :  { %v1376_v1 = vunpack.c.l.b16 %v1366_v6 }
 0x41e   :  { %v1255_v49 = vpop.trf.xlu2 }
 0x41f   :  { %v1373_v47 = vpack.c.bf16 %v1255_v49, %v1255_v49 }
 0x421   :  { %v1223_v50 = vpop.trf.xlu0  ;;  %v1443_v53 = vunpack.c.l.b16 %v1373_v47 }
 0x422   :  { %v1159_v54 = vpop.trf.xlu1  ;;  %v1371_v61 = vpack.c.bf16 %v1223_v50, %v1223_v50  ;;  %v1295_v26 = vpop.f32.mrf.mxu2 }
 0x423   :  { %v1367_v17 = vpack.c.bf16 %v1159_v54, %v1159_v54  ;;  %v1444_v57 = vpack.c.b16 %v1443_v53, %v1442_v51 }
 0x424   :  { %v1421_v60 = vunpack.c.l.b16 %v1371_v61 }
 0x425   :  { %v1377_v62 = vunpack.c.l.b16 %v1367_v17  ;;  %1635 = vmatmul.bf16.vlgmr.msrb.gmra.mxu1 %v3424_v44  ;;  %2511 = vmatmul.msk.bf16.vlgmr.msrb.gmra.mxu3 %vm933_vm1, %v1444_v57 }
 0x426   :  { %v1422_v0 = vpack.c.b16 %v1421_v60, %v1420_v56 }
 0x427   :  { %v1378_v14 = vpack.c.b16 %v1377_v62, %v1376_v1 }
 0x428   :  { %2510 = vmatmul.msk.bf16.vlgmr.msrb.gmra.mxu2 %vm933_vm1, %v1422_v0 }
 0x429   :  { %2508 = vmatmul.msk.bf16.vlgmr.msra.gmra.mxu0 %vm933_vm1, %v1378_v14 }
 0x42a   :  { %1814 = vmatpush.bf16.msra.mxu0 %v3591_v55  ;;  %v1297_v3 = vpop.f32.mrf.mxu2 }
 0x42b   :  { %v1462_v44 = vpack.c.bf16 %v1297_v3, %v1295_v26 }
 0x42e   :  { %1815 = vmatpush.bf16.msra.mxu0 %v3601_v16 }
 0x432   :  { %1816 = vmatpush.bf16.msra.mxu0 %v3604_v30  ;;  %v1317_v5 = vpop.f32.mrf.mxu3  ;;  %v2787_v30 = vld [vmem:[#allocation14 + $0x18] sm:$0xff] }
 0x435   :  { %1640 = vmatmul.bf16.gmra.mxu1 %v3431_v58 }
 0x436   :  { %1817 = vmatpush.bf16.msra.mxu0 %v3607_v31 }
 0x439   :  { %1558 = vmatmul.bf16.vlgmr.msrb.gmra.mxu0 %v1462_v44 }
 0x43a   :  { %1818 = vmatpush.bf16.msra.mxu0 %v3610_v4  ;;  %v1319_v7 = vpop.f32.mrf.mxu3  ;;  %v2784_v4 = vld [vmem:[#allocation14] sm:$0xff] }
 0x43b   :  { %v1463_v55 = vpack.c.bf16 %v1319_v7, %v1317_v5 }
 0x43e   :  { %1819 = vmatpush.bf16.msra.mxu0 %v3613_v32 }
 0x442   :  { %1820 = vmatpush.bf16.msra.mxu0 %v3616_v34  ;;  %v1339_v10 = vpop.f32.mrf.mxu2 }
 0x445   :  { %1645 = vmatmul.bf16.gmra.mxu1 %v3438_v8  ;;  %v2790_v8 = vld [vmem:[#allocation14 + $0x30] sm:$0xff] }
 0x446   :  { %1821 = vmatpush.bf16.msra.mxu0 %v3619_v21  ;;  %1749 = vmatpush.bf16.msra.mxu2 %v2790_v8 }
 0x447   :  { %1864 = vmatpush.bf16.msra.mxu1 %v2790_v8 }
 0x449   :  { %1563 = vmatmul.bf16.gmra.mxu0 %v1463_v55 }
 0x44a   :  { %v1341_v58 = vpop.f32.mrf.mxu2  ;;  %1750 = vmatpush.bf16.msra.mxu2 %v2789_v20 }
 0x44b   :  { %v1464_v11 = vpack.c.bf16 %v1341_v58, %v1339_v10  ;;  %1865 = vmatpush.bf16.msra.mxu1 %v2789_v20 }
 0x452   :  { %v1361_v37 = vpop.f32.mrf.mxu3 }
 0x455   :  { %1650 = vmatmul.bf16.gmra.mxu1 %v3444_v22  ;;  %v2788_v22 = vld [vmem:[#allocation14 + $0x20] sm:$0xff] }
 0x456   :  { %1751 = vmatpush.bf16.msra.mxu2 %v2788_v22  ;;  %1866 = vmatpush.bf16.msra.mxu1 %v2788_v22 }
 0x459   :  { %1568 = vmatmul.bf16.gmra.mxu0 %v1464_v11 }
 0x45a   :  { %v1363_v12 = vpop.f32.mrf.mxu3  ;;  %1752 = vmatpush.bf16.msra.mxu2 %v2787_v30  ;;  %1867 = vmatpush.bf16.msra.mxu1 %v2787_v30 }
 0x45b   :  { %v1465_v28 = vpack.c.bf16 %v1363_v12, %v1361_v37 }
 0x469   :  { %1573 = vmatmul.bf16.gmra.mxu0 %v1465_v28 }
 0x479   :  { %1822 = vmatmul.bf16.vlgmr.msra.gmra.mxu0 %v3426_v45  ;;  %v2786_v45 = vld [vmem:[#allocation14 + $0x10] sm:$0xff] }
 0x47a   :  { %1753 = vmatpush.bf16.msra.mxu2 %v2786_v45  ;;  %1868 = vmatpush.bf16.msra.mxu1 %v2786_v45 }
 0x489   :  { %1827 = vmatmul.bf16.gmra.mxu0 %v3433_v59  ;;  %v2785_v59 = vld [vmem:[#allocation14 + $0x8] sm:$0xff] }
 0x48a   :  { %1754 = vmatpush.bf16.msra.mxu2 %v2785_v59  ;;  %1869 = vmatpush.bf16.msra.mxu1 %v2785_v59 }
 0x48e   :  { %1755 = vmatpush.bf16.msra.mxu2 %v2784_v4  ;;  %1870 = vmatpush.bf16.msra.mxu1 %v2784_v4 }
 0x492   :  { %v1413_v16 = vpop.f32.mrf.mxu1 }
 0x499   :  { %1832 = vmatmul.bf16.gmra.mxu0 %v3440_v9 }
 0x49a   :  { %v1415_v31 = vpop.f32.mrf.mxu1 }
 0x49b   :  { %v1467_v2 = vpack.c.bf16 %v1415_v31, %v1413_v16 }
 0x4a2   :  { %v1636_v32 = vpop.f32.mrf.mxu1 }
 0x4a6   :  { %v1391_v29 = vpop.f32.mrf.mxu0 }
 0x4a8   :  { %v1457_v50 = vpop.f32.mrf.mxu3 }
 0x4a9   :  { %1837 = vmatmul.bf16.gmra.mxu0 %v3446_v23 }
 0x4aa   :  { %v1638_v9 = vpop.f32.mrf.mxu1 }
 0x4ab   :  { %v1435_v23 = vpop.f32.mrf.mxu2 }
 0x4ae   :  { %v1393_v33 = vpop.f32.mrf.mxu0 }
 0x4af   :  { %v1466_v34 = vpack.c.bf16 %v1393_v33, %v1391_v29 }
 0x4b0   :  { %v1459_v57 = vpop.f32.mrf.mxu3 }
 0x4b1   :  { %1793 = vmatmul.bf16.vlgmr.msra.gmra.mxu3 %v1466_v34  ;;  %v1469_v62 = vpack.c.bf16 %v1459_v57, %v1457_v50 }
 0x4b2   :  { %v1641_v36 = vpop.f32.mrf.mxu1 }
 0x4b3   :  { %v1437_v40 = vpop.f32.mrf.mxu2 }
 0x4b4   :  { %v1468_v49 = vpack.c.bf16 %v1437_v40, %v1435_v23 }
 0x4b6   :  { %v1559_v15 = vpop.f32.mrf.mxu0 }
 0x4b7   :  { %v1637_v21 = vadd.f32 %v1636_v32, %v1559_v15 }
 0x4b9   :  { %v1660_v13 = vadd.f32 %v3645_v35, %v1637_v21 }
 0x4ba   :  { %v1643_v27 = vpop.f32.mrf.mxu1 }
 0x4bb   :  { %v1668_v42 = vmax.f32 %v1660_v13, 0.0 }
 0x4be   :  { %v1561_v39 = vpop.f32.mrf.mxu0 }
 0x4bf   :  { %v1639_v19 = vadd.f32 %v1638_v9, %v1561_v39 }
 0x4c1   :  { %v1661_v41 = vadd.f32 %v3645_v35, %v1639_v19  ;;  %1798 = vmatmul.bf16.gmra.mxu3 %v1467_v2 }
 0x4c2   :  { %v1646_v47 = vpop.f32.mrf.mxu1 }
 0x4c3   :  { %v1669_v38 = vmax.f32 %v1661_v41, 0.0 }
 0x4c5   :  { %v1676_v24 = vpack.c.bf16 %v1669_v38, %v1668_v42 }
 0x4c6   :  { %v1564_v43 = vpop.f32.mrf.mxu0 }
 0x4c7   :  { %1756 = vmatmul.bf16.vlgmr.msra.gmra.mxu2 %v1676_v24  ;;  %v1642_v46 = vadd.f32 %v1641_v36, %v1564_v43 }
 0x4c9   :  { %v1662_v25 = vadd.f32 %v3645_v35, %v1642_v46  ;;  %v2798_v46 = vld [vmem:[#allocation16 + $0x30] sm:$0xff] }
 0x4ca   :  { %v1648_v61 = vpop.f32.mrf.mxu1 }
 0x4cb   :  { %v1670_v51 = vmax.f32 %v1662_v25, 0.0 }
 0x4ce   :  { %v1566_v48 = vpop.f32.mrf.mxu0 }
 0x4cf   :  { %v1644_v18 = vadd.f32 %v1643_v27, %v1566_v48  ;;  %v2799_v27 = vld [vmem:[#allocation16 + $0x38] sm:$0xff] }
 0x4d0   :  { %2154 = vmatpush.bf16.msrb.mxu3 %v2799_v27 }
 0x4d1   :  { %v1663_v6 = vadd.f32 %v3645_v35, %v1644_v18  ;;  %1803 = vmatmul.bf16.gmra.mxu3 %v1468_v49  ;;  %v2797_v49 = vld [vmem:[#allocation16 + $0x28] sm:$0xff] }
 0x4d2   :  { %v1651_v44 = vpop.f32.mrf.mxu1 }
 0x4d3   :  { %v1671_v53 = vmax.f32 %v1663_v6, 0.0 }
 0x4d4   :  { %2155 = vmatpush.bf16.msrb.mxu3 %v2798_v46 }
 0x4d5   :  { %v1677_v54 = vpack.c.bf16 %v1671_v53, %v1670_v51  ;;  %v2796_v51 = vld [vmem:[#allocation16 + $0x20] sm:$0xff] }
 0x4d6   :  { %v1569_v56 = vpop.f32.mrf.mxu0 }
 0x4d7   :  { %1761 = vmatmul.bf16.gmra.mxu2 %v1677_v54  ;;  %v1647_v17 = vadd.f32 %v1646_v47, %v1569_v56 }
 0x4d8   :  { %2156 = vmatpush.bf16.msrb.mxu3 %v2797_v49 }
 0x4d9   :  { %v1664_v1 = vadd.f32 %v3645_v35, %v1647_v17  ;;  %v3664_v17 = vld [vmem:[%s3714_s11] ss:$0 sm:$0xff] }
 0x4da   :  { %v1653_v10 = vpop.f32.mrf.mxu1 }
 0x4db   :  { %v1672_v26 = vmax.f32 %v1664_v1, 0.0 }
 0x4dc   :  { %2157 = vmatpush.bf16.msrb.mxu3 %v2796_v51 }
 0x4de   :  { %v1571_v60 = vpop.f32.mrf.mxu0 }
 0x4df   :  { %v1649_v0 = vadd.f32 %v1648_v61, %v1571_v60  ;;  %v2795_v60 = vld [vmem:[#allocation16 + $0x18] sm:$0xff] }
 0x4e0   :  { %2158 = vmatpush.bf16.msrb.mxu3 %v2795_v60 }
 0x4e1   :  { %v1665_v14 = vadd.f32 %v3645_v35, %v1649_v0  ;;  %1808 = vmatmul.bf16.gmra.mxu3 %v1469_v62 }
 0x4e3   :  { %v1673_v3 = vmax.f32 %v1665_v14, 0.0  ;;  %v2794_v14 = vld [vmem:[#allocation16 + $0x10] sm:$0xff] }
 0x4e4   :  { %2159 = vmatpush.bf16.msrb.mxu3 %v2794_v14 }
 0x4e5   :  { %v1678_v5 = vpack.c.bf16 %v1673_v3, %v1672_v26 }
 0x4e6   :  { %v1574_v7 = vpop.f32.mrf.mxu0 }
 0x4e7   :  { %1766 = vmatmul.bf16.gmra.mxu2 %v1678_v5  ;;  %v1652_v55 = vadd.f32 %v1651_v44, %v1574_v7 }
 0x4e9   :  { %v1666_v11 = vadd.f32 %v3645_v35, %v1652_v55  ;;  %v2793_v55 = vld [vmem:[#allocation16 + $0x8] sm:$0xff] }
 0x4ea   :  { %2160 = vmatpush.bf16.msrb.mxu3 %v2793_v55  ;;  %v2804_v55 = vld [vmem:[#allocation17 + $0x20] sm:$0xff] }
 0x4eb   :  { %v1674_v28 = vmax.f32 %v1666_v11, 0.0 }
 0x4ee   :  { %v1576_v58 = vpop.f32.mrf.mxu0 }
 0x4ef   :  { %v1654_v37 = vadd.f32 %v1653_v10, %v1576_v58 }
 0x4f1   :  { %v1667_v12 = vadd.f32 %v3645_v35, %v1654_v37 }
 0x4f3   :  { %v1675_v52 = vmax.f32 %v1667_v12, 0.0 }
 0x4f5   :  { %v1679_v8 = vpack.c.bf16 %v1675_v52, %v1674_v28  ;;  %v2792_v52 = vld [vmem:[#allocation16] sm:$0xff] }
 0x4f6   :  { %v1823_v20 = vpop.f32.mrf.mxu0  ;;  %2161 = vmatpush.bf16.msrb.mxu3 %v2792_v52 }
 0x4f7   :  { %1771 = vmatmul.bf16.gmra.mxu2 %v1679_v8 }
 0x4fe   :  { %v1825_v22 = vpop.f32.mrf.mxu0 }
 0x506   :  { %v1828_v45 = vpop.f32.mrf.mxu0 }
 0x50e   :  { %v1830_v9 = vpop.f32.mrf.mxu0 }
 0x516   :  { %v1833_v19 = vpop.f32.mrf.mxu0 }
 0x51e   :  { %v1835_v40 = vpop.f32.mrf.mxu0 }
 0x526   :  { %v1838_v56 = vpop.f32.mrf.mxu0 }
 0x52e   :  { %v1840_v10 = vpop.f32.mrf.mxu0 }
 0x534   :  { %v1794_v16 = vpop.f32.mrf.mxu3 }
 0x535   :  { %v1824_v30 = vadd.f32 %v1823_v20, %v1794_v16 }
 0x537   :  { %v1843_v59 = vadd.f32 %v3645_v35, %v1824_v30 }
 0x539   :  { %v1851_v32 = vmax.f32 %v1843_v59, 0.0 }
 0x53c   :  { %v1796_v31 = vpop.f32.mrf.mxu3 }
 0x53d   :  { %v1826_v4 = vadd.f32 %v1825_v22, %v1796_v31 }
 0x53f   :  { %v1844_v29 = vadd.f32 %v3645_v35, %v1826_v4 }
 0x541   :  { %v1852_v33 = vmax.f32 %v1844_v29, 0.0 }
 0x543   :  { %v1859_v34 = vpack.c.bf16 %v1852_v33, %v1851_v32 }
 0x544   :  { %v1799_v15 = vpop.f32.mrf.mxu3 }
 0x545   :  { %1871 = vmatmul.bf16.vlgmr.msra.gmra.mxu1 %v1859_v34  ;;  %v1829_v21 = vadd.f32 %v1828_v45, %v1799_v15 }
 0x547   :  { %v1845_v2 = vadd.f32 %v3645_v35, %v1829_v21 }
 0x549   :  { %v1853_v23 = vmax.f32 %v1845_v2, 0.0 }
 0x54a   :  { %v1757_v36 = vpop.f32.mrf.mxu2 }
 0x54b   :  { %v1758_v0 = vadd.f32 %v3664_v17, %v1757_v36 }
 0x54c   :  { %v1801_v39 = vpop.f32.mrf.mxu3 }
 0x54d   :  { %v1831_v13 = vadd.f32 %v1830_v9, %v1801_v39  ;;  %v1777_v5 = vmax.f32 %v1758_v0, 0.0  ;;  %v2807_v0 = vld [vmem:[#allocation17 + $0x38] sm:$0xff] }
 0x54e   :  { %2080 = vmatpush.bf16.msrb.mxu2 %v2807_v0 }
 0x54f   :  { %v1846_v41 = vadd.f32 %v3645_v35, %v1831_v13  ;;  %v1909_v8 = vrot.slane %v1777_v5, 4 }
 0x551   :  { %v1854_v42 = vmax.f32 %v1846_v41, 0.0  ;;  %v1910_v4 = vadd.f32 %v1909_v8, %v1777_v5 }
 0x552   :  { %v1759_v38 = vpop.f32.mrf.mxu2 }
 0x553   :  { %v1860_v24 = vpack.c.bf16 %v1854_v42, %v1853_v23  ;;  %v1911_v34 = vrot.slane %v1910_v4, 2 }
 0x554   :  { %v1804_v43 = vpop.f32.mrf.mxu3 }
 0x555   :  { %1876 = vmatmul.bf16.gmra.mxu1 %v1860_v24  ;;  %v1834_v48 = vadd.f32 %v1833_v19, %v1804_v43  ;;  %v1912_v36 = vadd.f32 %v1911_v34, %v1910_v4 }
 0x557   :  { %v1847_v47 = vadd.f32 %v3645_v35, %v1834_v48  ;;  %v1913_v19 = vrot.slane %v1912_v36, 1 }
 0x559   :  { %v1855_v53 = vmax.f32 %v1847_v47, 0.0  ;;  %v1914_v27 = vadd.f32 %v1913_v19, %v1912_v36 }
 0x55a   :  { %v1762_v25 = vpop.f32.mrf.mxu2 }
 0x55b   :  { %v1763_v62 = vadd.f32 %v3664_v17, %v1762_v25  ;;  %v1976_v25 = vpack.c.bf16 %v1914_v27, %v1914_v27 }
 0x55c   :  { %v1806_v18 = vpop.f32.mrf.mxu3 }
 0x55d   :  { %v1836_v6 = vadd.f32 %v1835_v40, %v1806_v18  ;;  %v1779_v26 = vmax.f32 %v1763_v62, 0.0 }
 0x55f   :  { %v1848_v50 = vadd.f32 %v3645_v35, %v1836_v6  ;;  %v1916_v11 = vrot.slane %v1779_v26, 4 }
 0x561   :  { %v1856_v54 = vmax.f32 %v1848_v50, 0.0  ;;  %v1917_v16 = vadd.f32 %v1916_v11, %v1779_v26  ;;  %v2097_v50 = vunpack.c.l.b16 %v1976_v25  ;;  %v2806_v26 = vld [vmem:[#allocation17 + $0x30] sm:$0xff] }
 0x562   :  { %v1764_v61 = vpop.f32.mrf.mxu2  ;;  %2081 = vmatpush.bf16.msrb.mxu2 %v2806_v26 }
 0x563   :  { %v1861_v57 = vpack.c.bf16 %v1856_v54, %v1855_v53  ;;  %v1918_v32 = vrot.slane %v1917_v16, 2 }
 0x564   :  { %v1809_v1 = vpop.f32.mrf.mxu3 }
 0x565   :  { %1881 = vmatmul.bf16.gmra.mxu1 %v1861_v57  ;;  %v1839_v3 = vadd.f32 %v1838_v56, %v1809_v1  ;;  %v1919_v9 = vadd.f32 %v1918_v32, %v1917_v16  ;;  %v2802_v16 = vld [vmem:[#allocation17 + $0x10] sm:$0xff] }
 0x567   :  { %v1849_v37 = vadd.f32 %v3645_v35, %v1839_v3  ;;  %v1920_v2 = vrot.slane %v1919_v9, 1  ;;  %v2805_v3 = vld [vmem:[#allocation17 + $0x28] sm:$0xff] }
 0x568   :  { %2082 = vmatpush.bf16.msrb.mxu2 %v2805_v3 }
 0x569   :  { %v1857_v30 = vmax.f32 %v1849_v37, 0.0  ;;  %v1921_v23 = vadd.f32 %v1920_v2, %v1919_v9 }
 0x56a   :  { %v1767_v44 = vpop.f32.mrf.mxu2 }
 0x56b   :  { %v1768_v7 = vadd.f32 %v3664_v17, %v1767_v44  ;;  %v1977_v46 = vpack.c.bf16 %v1921_v23, %v1921_v23  ;;  %v917_v44 = vshrl.u32 %v913_v63, 7 }
 0x56c   :  { %v1811_v58 = vpop.f32.mrf.mxu3  ;;  %2083 = vmatpush.bf16.msrb.mxu2 %v2804_v55 }
 0x56d   :  { %v1781_v12 = vmax.f32 %v1768_v7, 0.0  ;;  %v1841_v28 = vadd.f32 %v1840_v10, %v1811_v58  ;;  %v2098_v18 = vunpack.c.l.b16 %v1977_v46  ;;  %v918_v58 = vadd.s32 8, %v917_v44 }
 0x56f   :  { %v1923_v20 = vrot.slane %v1781_v12, 4  ;;  %v1850_v22 = vadd.f32 %v3645_v35, %v1841_v28  ;;  %v2101_v53 = vsel %vm2024_vm2, %v2098_v18, %v2097_v50  ;;  %vm922_vm5 = vcmp.lt.s32.totalorder %v918_v58, 12 }
 0x571   :  { %v1858_v45 = vmax.f32 %v1850_v22, 0.0  ;;  %v1924_v31 = vadd.f32 %v1923_v20, %v1781_v12  ;;  %v2803_v12 = vld [vmem:[#allocation17 + $0x18] sm:$0xff] }
 0x572   :  { %v1769_v59 = vpop.f32.mrf.mxu2  ;;  %2084 = vmatpush.bf16.msrb.mxu2 %v2803_v12 }
 0x573   :  { %v1862_v29 = vpack.c.bf16 %v1858_v45, %v1857_v30  ;;  %v1925_v33 = vrot.slane %v1924_v31, 2 }
 0x575   :  { %1886 = vmatmul.bf16.gmra.mxu1 %v1862_v29  ;;  %v1926_v15 = vadd.f32 %v1925_v33, %v1924_v31  ;;  %v2801_v33 = vld [vmem:[#allocation17 + $0x8] sm:$0xff] }
 0x576   :  { %2085 = vmatpush.bf16.msrb.mxu2 %v2802_v16  ;;  %v2809_v16 = vld [vmem:[#allocation19 + $0x8] sm:$0xff] }
 0x577   :  { %v1927_v13 = vrot.slane %v1926_v15, 1 }
 0x579   :  { %v1928_v38 = vadd.f32 %v1927_v13, %v1926_v15 }
 0x57a   :  { %v1772_v21 = vpop.f32.mrf.mxu2  ;;  %2086 = vmatpush.bf16.msrb.mxu2 %v2801_v33  ;;  %v2845_v33 = vld [vmem:[%s3717_s14] ss:$0 sm:$0xff] }
 0x57b   :  { %v1773_v39 = vadd.f32 %v3664_v17, %v1772_v21  ;;  %v1978_v48 = vpack.c.bf16 %v1928_v38, %v1928_v38  ;;  %v2800_v21 = vld [vmem:[#allocation17] sm:$0xff] }
 0x57d   :  { %v1783_v35 = vmax.f32 %v1773_v39, 0.0  ;;  %v2099_v6 = vunpack.c.l.b16 %v1978_v48  ;;  %v2815_v48 = vld [vmem:[#allocation19 + $0x38] sm:$0xff] }
 0x57e   :  { %2087 = vmatpush.bf16.msrb.mxu2 %v2800_v21 }
 0x57f   :  { %v1930_v41 = vrot.slane %v1783_v35, 4  ;;  %v2102_v56 = vsel %vm2026_vm3, %v2099_v6, %v2101_v53 }
 0x581   :  { %v1931_v42 = vadd.f32 %v1930_v41, %v1783_v35 }
 0x582   :  { %v1774_v24 = vpop.f32.mrf.mxu2  ;;  %2242 = vmatpush.bf16.msra.mxu2 %v2815_v48 }
 0x583   :  { %v1932_v43 = vrot.slane %v1931_v42, 2 }
 0x585   :  { %v1933_v40 = vadd.f32 %v1932_v43, %v1931_v42 }
 0x587   :  { %v1934_v49 = vrot.slane %v1933_v40, 1 }
 0x589   :  { %v1935_v47 = vadd.f32 %v1934_v49, %v1933_v40 }
 0x58b   :  { %v1979_v51 = vpack.c.bf16 %v1935_v47, %v1935_v47  ;;  %v2814_v47 = vld [vmem:[#allocation19 + $0x30] sm:$0xff] }
 0x58c   :  { %2243 = vmatpush.bf16.msra.mxu2 %v2814_v47 }
 0x58d   :  { %v2100_v54 = vunpack.c.l.b16 %v1979_v51 }
 0x58f   :  { %v2103_v61 = vsel %vm2028_vm4, %v2100_v54, %v2102_v56  ;;  %v2813_v56 = vld [vmem:[#allocation19 + $0x28] sm:$0xff] }
 0x590   :  { %v2104_v57 = vpack.c.b16 %v2103_v61, %v2103_v61  ;;  %2244 = vmatpush.bf16.msra.mxu2 %v2813_v56 }
 0x592   :  { %2162 = vmatmul.bf16.vlgmr.msrb.gmra.mxu3 %v2104_v57 }
 0x5c2   :  { %v1872_v60 = vpop.f32.mrf.mxu1 }
 0x5c3   :  { %v1873_v52 = vadd.f32 %v3664_v17, %v1872_v60 }
 0x5c5   :  { %v1892_v31 = vmax.f32 %v1873_v52, 0.0 }
 0x5ca   :  { %v1874_v1 = vpop.f32.mrf.mxu1 }
 0x5cb   :  { %v1875_v10 = vadd.f32 %v3664_v17, %v1874_v1 }
 0x5cd   :  { %v1893_v28 = vmax.f32 %v1875_v10, 0.0 }
 0x5cf   :  { %v1941_v30 = vsel %vm922_vm5, %v1893_v28, 0.0 }
 0x5d0   :  { %v1948_v29 = vadd.f32 %v1941_v30, %v1892_v31  ;;  %v2808_v30 = vld [vmem:[#allocation19] sm:$0xff]  ;;  %v2822_v31 = vld [vmem:[#allocation20 + $0x30] sm:$0xff] }
 0x5d2   :  { %v1877_v62 = vpop.f32.mrf.mxu1  ;;  %v1949_v36 = vrot.slane %v1948_v29, 4 }
 0x5d3   :  { %v1878_v37 = vadd.f32 %v3664_v17, %v1877_v62  ;;  %v2812_v62 = vld [vmem:[#allocation19 + $0x20] sm:$0xff] }
 0x5d4   :  { %v1950_v19 = vadd.f32 %v1949_v36, %v1948_v29  ;;  %2245 = vmatpush.bf16.msra.mxu2 %v2812_v62  ;;  %v2819_v29 = vld [vmem:[#allocation20 + $0x18] sm:$0xff] }
 0x5d5   :  { %v1894_v8 = vmax.f32 %v1878_v37, 0.0  ;;  %v2810_v37 = vld [vmem:[#allocation19 + $0x10] sm:$0xff] }
 0x5d6   :  { %v1951_v42 = vrot.slane %v1950_v19, 2 }
 0x5d8   :  { %v1952_v25 = vadd.f32 %v1951_v42, %v1950_v19 }
 0x5da   :  { %v1879_v14 = vpop.f32.mrf.mxu1  ;;  %v1953_v53 = vrot.slane %v1952_v25, 1 }
 0x5db   :  { %v1880_v5 = vadd.f32 %v3664_v17, %v1879_v14 }
 0x5dc   :  { %v1954_v60 = vadd.f32 %v1953_v53, %v1952_v25 }
 0x5dd   :  { %v1895_v11 = vmax.f32 %v1880_v5, 0.0  ;;  %v2811_v5 = vld [vmem:[#allocation19 + $0x18] sm:$0xff] }
 0x5de   :  { %v1996_v3 = vpack.c.bf16 %v1954_v60, %v1954_v60  ;;  %2246 = vmatpush.bf16.msra.mxu2 %v2811_v5 }
 0x5df   :  { %v1943_v63 = vsel %vm922_vm5, %v1895_v11, 0.0 }
 0x5e0   :  { %v1955_v59 = vadd.f32 %v1943_v63, %v1894_v8  ;;  %v2020_v58 = vunpack.c.l.b16 %v1996_v3 }
 0x5e2   :  { %v1882_v7 = vpop.f32.mrf.mxu1  ;;  %v1956_v9 = vrot.slane %v1955_v59, 4  ;;  %2247 = vmatpush.bf16.msra.mxu2 %v2810_v37 }
 0x5e3   :  { %v1883_v20 = vadd.f32 %v3664_v17, %v1882_v7 }
 0x5e4   :  { %v1957_v35 = vadd.f32 %v1956_v9, %v1955_v59  ;;  %v2821_v59 = vld [vmem:[#allocation20 + $0x28] sm:$0xff] }
 0x5e5   :  { %v1896_v32 = vmax.f32 %v1883_v20, 0.0 }
 0x5e6   :  { %v1958_v41 = vrot.slane %v1957_v35, 2  ;;  %2248 = vmatpush.bf16.msra.mxu2 %v2809_v16 }
 0x5e8   :  { %v1959_v43 = vadd.f32 %v1958_v41, %v1957_v35  ;;  %v2816_v35 = vld [vmem:[#allocation20] sm:$0xff] }
 0x5ea   :  { %v1884_v22 = vpop.f32.mrf.mxu1  ;;  %v1960_v6 = vrot.slane %v1959_v43, 1  ;;  %2249 = vmatpush.bf16.msra.mxu2 %v2808_v30 }
 0x5eb   :  { %v1885_v45 = vadd.f32 %v3664_v17, %v1884_v22 }
 0x5ec   :  { %v1961_v61 = vadd.f32 %v1960_v6, %v1959_v43 }
 0x5ed   :  { %v1897_v4 = vmax.f32 %v1885_v45, 0.0  ;;  %v2823_v45 = vld [vmem:[#allocation20 + $0x38] sm:$0xff] }
 0x5ee   :  { %v1997_v0 = vpack.c.bf16 %v1961_v61, %v1961_v61  ;;  %2325 = vmatpush.bf16.msra.mxu3 %v2823_v45 }
 0x5ef   :  { %v1945_v34 = vsel %vm922_vm5, %v1897_v4, 0.0  ;;  %v2820_v4 = vld [vmem:[#allocation20 + $0x20] sm:$0xff] }
 0x5f0   :  { %v1962_v15 = vadd.f32 %v1945_v34, %v1896_v32  ;;  %v2021_v7 = vunpack.c.l.b16 %v1997_v0  ;;  %v2818_v32 = vld [vmem:[#allocation20 + $0x10] sm:$0xff] }
 0x5f2   :  { %v1963_v39 = vrot.slane %v1962_v15, 4  ;;  %v1887_v2 = vpop.f32.mrf.mxu1  ;;  %v2025_v12 = vsel %vm2024_vm2, %v2021_v7, %v2020_v58  ;;  %2326 = vmatpush.bf16.msra.mxu3 %v2822_v31 }
 0x5f3   :  { %v1888_v38 = vadd.f32 %v3664_v17, %v1887_v2  ;;  %v2817_v2 = vld [vmem:[#allocation20 + $0x8] sm:$0xff] }
 0x5f4   :  { %v1964_v13 = vadd.f32 %v1963_v39, %v1962_v15 }
 0x5f5   :  { %v1898_v49 = vmax.f32 %v1888_v38, 0.0 }
 0x5f6   :  { %v1965_v23 = vrot.slane %v1964_v13, 2  ;;  %2327 = vmatpush.bf16.msra.mxu3 %v2821_v59 }
 0x5f8   :  { %v1966_v46 = vadd.f32 %v1965_v23, %v1964_v13  ;;  %v2846_v13 = vld [vmem:[%s3719_s16] ss:$0 sm:$0xff]  ;;  %s3251_s16 = smov [#allocation22]  }
 0x5f9   :  { %s2358_s23 = sshll.u32 %s3251_s16, 4  ;;  %s2359_s23 = int_to_ptr.vmem [resolvable:$true] %s2358_s23 }
 0x5fa   :  { %v1889_v24 = vpop.f32.mrf.mxu1  ;;  %v1967_v51 = vrot.slane %v1966_v46, 1  ;;  %2328 = vmatpush.bf16.msra.mxu3 %v2820_v4 }
 0x5fb   :  { %v1890_v27 = vadd.f32 %v3664_v17, %v1889_v24  ;;  %v2847_v24 = vld [vmem:[%s3721_s18] ss:$0 sm:$0xff] }
 0x5fc   :  { %v1968_v17 = vadd.f32 %v1967_v51, %v1966_v46 }
 0x5fd   :  { %v1899_v40 = vmax.f32 %v1890_v27, 0.0 }
 0x5fe   :  { %v1998_v26 = vpack.c.bf16 %v1968_v17, %v1968_v17  ;;  %2329 = vmatpush.bf16.msra.mxu3 %v2819_v29 }
 0x5ff   :  { %v1947_v18 = vsel %vm922_vm5, %v1899_v40, 0.0 }
 0x600   :  { %v1969_v50 = vadd.f32 %v1947_v18, %v1898_v49  ;;  %v2022_v10 = vunpack.c.l.b16 %v1998_v26 }
 0x602   :  { %v1970_v54 = vrot.slane %v1969_v50, 4  ;;  %v2027_v52 = vsel %vm2026_vm3, %v2022_v10, %v2025_v12  ;;  %2330 = vmatpush.bf16.msra.mxu3 %v2818_v32 }
 0x604   :  { %v1971_v57 = vadd.f32 %v1970_v54, %v1969_v50 }
 0x606   :  { %v1972_v1 = vrot.slane %v1971_v57, 2  ;;  %2331 = vmatpush.bf16.msra.mxu3 %v2817_v2 }
 0x608   :  { %v1973_v14 = vadd.f32 %v1972_v1, %v1971_v57 }
 0x60a   :  { %v1974_v44 = vrot.slane %v1973_v14, 1  ;;  %2332 = vmatpush.bf16.msra.mxu3 %v2816_v35 }
 0x60c   :  { %v1975_v55 = vadd.f32 %v1974_v44, %v1973_v14 }
 0x60e   :  { %v1999_v11 = vpack.c.bf16 %v1975_v55, %v1975_v55 }
 0x610   :  { %v2023_v28 = vunpack.c.l.b16 %v1999_v11 }
 0x612   :  { %v2029_v63 = vsel %vm2028_vm4, %v2023_v28, %v2027_v52 }
 0x613   :  { %v2030_v8 = vpack.c.b16 %v2029_v63, %v2029_v63 }
 0x615   :  { %2088 = vmatmul.bf16.vlgmr.msrb.gmra.mxu2 %v2030_v8  ;;  %v2163_v20 = vpop.f32.mrf.mxu3 }
 0x61d   :  { %v2165_v22 = vpop.f32.mrf.mxu3 }
 0x698   :  { %v2089_v34 = vpop.f32.mrf.mxu2 }
 0x699   :  { %v2164_v9 = vadd.f32 %v2163_v20, %v2089_v34 }
 0x69b   :  { %v2171_v15 = vadd.f32 %v2845_v33, %v2164_v9 }
 0x69d   :  { %v2172_v21 = vmax.f32 %v2171_v15, 0.0 }
 0x69f   :  { %v2173_v36 = vpack.c.bf16 %v2172_v21, %v2172_v21 }
 0x6a0   :  { %v2091_v39 = vpop.f32.mrf.mxu2 }
 0x6a1   :  { %2250 = vmatmul.bf16.vlgmr.msra.gmra.mxu2 %v2173_v36 }
 0x724   :  { %v2251_v19 = vpop.f32.mrf.mxu2 }
 0x725   :  { %v2252_v41 = vadd.f32 %v2846_v13, %v2251_v19 }
 0x727   :  { %v2255_v23 = vmax.f32 %v2252_v41, 0.0 }
 0x729   :  { %v2256_v42 = vpack.c.bf16 %v2255_v23, %v2255_v23 }
 0x72b   :  { %2333 = vmatmul.bf16.vlgmr.msra.gmra.mxu3 %v2256_v42 }
 0x72c   :  { %v2253_v38 = vpop.f32.mrf.mxu2 }
 0x7ae   :  { %v2334_v27 = vpop.f32.mrf.mxu3 }
 0x7af   :  { %v2335_v43 = vadd.f32 %v2847_v24, %v2334_v27 }
 0x7b1   :  { %v2339_v46 = vsel %vm2338_vm6, %v2335_v43, -inf }
 0x7b2   :  { %2340 = vmax.xlane.f32.xlu0 %v2339_v46 }
 0x7b6   :  { %v2336_v40 = vpop.f32.mrf.mxu3 }
 0x825   :  { %v2341_v48 = vpop.xlane.xlu0 %2340 }
 0x826   :  { %v2342_v25 = vsub.f32 %v2335_v43, %v2341_v48 }
 0x828   :  { %v2343_v49 = vmul.f32 1.442695, %v2342_v25 }
 0x82a   :  { %2904 = vpow2.f32 %v2343_v49 }
 0x830   :  { %v2905_v18 = vpop.eup %2904 }
 0x831   :  { %v2345_v47 = vsel %vm2338_vm6, %v2905_v18, 0.0 }
 0x832   :  { %2346 = vadd.xlane.f32.xlu2 %v2345_v47 }
 0x8a5   :  { %v2347_v6 = vpop.xlane.xlu2 %2346 }
 0x8a6   :  { %2906 = vlog2.f32 %v2347_v6 }
 0x8ac   :  { %v2907_v50 = vpop.eup %2906 }
 0x8ad   :  { %v2349_v51 = vmul.f32 0.6931472, %v2907_v50 }
 0x8af   :  { %v2350_v53 = vadd.f32 %v2349_v51, %v2341_v48 }
 0x8b1   :  { %v2351_v54 = vsub.f32 %v2335_v43, %v2350_v53 }
 0x8b3   :  { %2352 = vst [vmem:[#allocation22] sm:$0xf] %v2351_v54 }
 0x8b4   :  { %2363 = dma.vmem_to_hbm [thread:$0]  %s2359_s23, 64, %s2361_s21, [#allocation4]  }
 0x8b5   :  { %3234 = dma.done.wait [#allocation4], 64  }
 0x8b6   :  { %3235 = vsyncadd [#allocation4], 4294967232 }
 0x8b7   :  { %2368 = vsyncpa [#allocation3], 1 }
 0x8b8   :  { %2369 = vsyncpa [#allocation6], 1 }
 0x8b9   :  { %2370 = vsyncpa [#allocation9], 1 }
 0x8ba   :  { %2371 = vsyncpa [#allocation12], 1 }
 0x8bb   :  { %2372 = vsyncpa [#allocation15], 1 }
 0x8bc   :  { %2373 = vsyncpa [#allocation18], 1 }
 0x8bd   :  { %2374 = vsyncpa [#allocation21], 1 }
 0x8be   :  { %2375 = vsyncpa [#allocation4], 1 }

</bundles_post_ra>
